<compile_context>
chip_gen: v7x
topology: tpu7x:2x2x1
jax: 0.10.0
libtpu: 0.0.40
codegen_flags: <defaults>
</compile_context>

<pallas_src>
import functools
import math

import jax
import jax.numpy as jnp
from jax.experimental import pallas as pl
from jax.experimental.pallas import tpu as pltpu


# ----------------------------- in-kernel helpers -----------------------------

def _layernorm(x, gamma, beta, eps=1e-5):
    mean = jnp.mean(x, axis=-1, keepdims=True)
    var = jnp.mean((x - mean) ** 2, axis=-1, keepdims=True)
    return (x - mean) * jax.lax.rsqrt(var + eps) * gamma + beta


def _gelu_exact(x):
    # torch.nn.GELU() default (erf-based, approximate='none')
    return 0.5 * x * (1.0 + jax.lax.erf(x * 0.7071067811865476))


def _qkt(q, k):
    # q @ k.T without materializing a transpose (contract last dims).
    return jax.lax.dot_general(q, k, (((1,), (1,)), ((), ())),
                               preferred_element_type=jnp.float32)


# ----------------------------- Pallas kernel ---------------------------------

def transformer_block_kernel(
    x_ref,        # (1, C, N)   this batch item's activations, spatial flattened
    wg_ref,       # (C, C)      Conv3d 1x1x1 weight, pre-transposed (in, out)
    wqkv_ref,     # (C, 3C)     fused [Wq*scale | Wk | Wv], pre-transposed
    wo_ref,       # (C, C)      out_proj, pre-transposed
    wm1_ref,      # (C, 2C)     mlp Linear 1, pre-transposed
    wm2_ref,      # (2C, C)     mlp Linear 2, pre-transposed
    vec_ref,      # (8, C)      rows: bg, ln1_g, ln1_b, bo, ln2_g, ln2_b, bm2, pad
    bqkv_ref,     # (1, 3C)     fused [bq*scale | bk | bv]
    bm1_ref,      # (1, 2C)
    o_ref,        # (1, C, N)
    *, num_heads, matmul_dtype,
):
    _, C, N = x_ref.shape
    H = num_heads
    dk = C // H
    dt = matmul_dtype

    bg  = vec_ref[0:1, :]
    g1  = vec_ref[1:2, :]
    b1  = vec_ref[2:3, :]
    bo  = vec_ref[3:4, :]
    g2  = vec_ref[4:5, :]
    b2  = vec_ref[5:6, :]
    bm2 = vec_ref[6:7, :]

    # (C, N) -> (N, C): small 2-D transpose on a VMEM tile (XLU slot).
    x_tok = x_ref[0].T                                                   # (N, C)

    # Conv3d kernel_size=1  ==  per-token linear.
    x = jnp.dot(x_tok.astype(dt), wg_ref[...],
                preferred_element_type=jnp.float32) + bg                 # (N, C) f32

    # ---------------- self-attention branch: x = x + SA(LN(x)) ---------------
    xln = _layernorm(x, g1, b1)
    qkv = jnp.dot(xln.astype(dt), wqkv_ref[...],
                  preferred_element_type=jnp.float32) + bqkv_ref[...]    # (N, 3C)

    acc = jnp.zeros((N, C), jnp.float32)
    for h in range(H):                       # static head loop, no concatenate
        c0 = h * dk
        qh = qkv[:, c0:c0 + dk].astype(dt)
        kh = qkv[:, C + c0:C + c0 + dk].astype(dt)
        vh = qkv[:, 2 * C + c0:2 * C + c0 + dk].astype(dt)
        att = _qkt(qh, kh)                   # scale already folded into Wq/bq
        att = att - jnp.max(att, axis=-1, keepdims=True)      # stable softmax
        p = jnp.exp(att)
        p = p * pl.reciprocal(jnp.sum(p, axis=-1, keepdims=True), approx=True)
        oh = jnp.dot(p.astype(dt), vh, preferred_element_type=jnp.float32)
        # Accumulate this head straight through its slice of the out-proj:
        # sum_h (oh @ Wo_t[h*dk:(h+1)*dk, :])  ==  concat_h(oh) @ Wo_t
        acc = acc + jnp.dot(oh.astype(dt), wo_ref[c0:c0 + dk, :],
                            preferred_element_type=jnp.float32)
    # attn_drop / resid_drop: identity at inference
    x = x + (acc + bo)

    # ---------------- MLP branch: x = x + MLP(LN(x)) --------------------------
    xln2 = _layernorm(x, g2, b2)
    h1 = jnp.dot(xln2.astype(dt), wm1_ref[...],
                 preferred_element_type=jnp.float32) + bm1_ref[...]
    h1 = _gelu_exact(h1)
    h2 = jnp.dot(h1.astype(dt), wm2_ref[...],
                 preferred_element_type=jnp.float32) + bm2
    y = x + h2                                                           # (N, C)

    # tokens (N, C) -> (C, N)
    o_ref[0] = y.T.astype(o_ref.dtype)


# ----------------------------- wrapper ----------------------------------------

def _pack_params(params, *, num_heads, matmul_dtype):
    """Pre-transpose / fuse / pack the 18 PyTorch-style parameters into 8 arrays."""
    (wg, bg, g1, b1, wq, bq, wk, bk, wv, bv, wo, bo,
     g2, b2, wm1, bm1, wm2, bm2) = params
    C = wg.shape[0]
    dk = C // num_heads
    s = 1.0 / math.sqrt(dk)                       # fold attention scale into Q

    wg_t   = wg.T                                              # (C, C)
    wqkv_t = jnp.concatenate([wq.T * s, wk.T, wv.T], axis=1)   # (C, 3C)
    bqkv   = jnp.concatenate([bq * s, bk, bv], axis=1)         # (1, 3C)
    wo_t   = wo.T                                              # (C, C)
    wm1_t  = wm1.T                                             # (C, 2C)
    wm2_t  = wm2.T                                             # (2C, C)
    vecs   = jnp.concatenate([bg, g1, b1, bo, g2, b2, bm2,
                              jnp.zeros_like(bg)], axis=0)     # (8, C)

    weights = tuple(w.astype(matmul_dtype) for w in (wg_t, wqkv_t, wo_t, wm1_t, wm2_t))
    return weights + (vecs.astype(jnp.float32),
                      bqkv.astype(jnp.float32),
                      bm1.astype(jnp.float32))


def my_transformer_block(x_ncthw, params, *, num_heads, matmul_dtype=jnp.float32):
    B, C, T, Hs, Ws = x_ncthw.shape
    N = T * Hs * Ws
    x_bcn = x_ncthw.reshape(B, C, N)              # free reshape — no HBM transpose

    packed = _pack_params(params, num_heads=num_heads, matmul_dtype=matmul_dtype)
    inputs = (x_bcn.astype(jnp.float32),) + packed

    def _const_spec(a):
        nd = a.ndim
        return pl.BlockSpec(a.shape, lambda b, nd=nd: (0,) * nd)   # resident weights

    in_specs = [pl.BlockSpec((1, C, N), lambda b: (b, 0, 0))] + \
               [_const_spec(a) for a in packed]

    out_bcn = pl.pallas_call(
        functools.partial(transformer_block_kernel,
                          num_heads=num_heads, matmul_dtype=matmul_dtype),
        out_shape=jax.ShapeDtypeStruct((B, C, N), jnp.float32),
        grid=(B,),                                 # one batch item per grid step
        in_specs=in_specs,
        out_specs=pl.BlockSpec((1, C, N), lambda b: (b, 0, 0)),
        compiler_params=pltpu.CompilerParams(dimension_semantics=("parallel",)),
    )(*inputs)

    return out_bcn.reshape(B, C, T, Hs, Ws)        # free reshape


# ----------------------------- pure-JAX reference ------------------------------

def reference_block(x_ncthw, params, *, num_heads):
    (wg, bg, g1, b1, wq, bq, wk, bk, wv, bv, wo, bo,
     g2, b2, wm1, bm1, wm2, bm2) = params
    B, C, T, Hs, Ws = x_ncthw.shape
    N = T * Hs * Ws
    x = x_ncthw.reshape(B, C, N).transpose(0, 2, 1)            # (B, N, C)
    x = x @ wg.T + bg

    def ln(z, g, be):
        m = z.mean(-1, keepdims=True)
        v = ((z - m) ** 2).mean(-1, keepdims=True)
        return (z - m) / jnp.sqrt(v + 1e-5) * g + be

    xln = ln(x, g1, b1)
    q = (xln @ wq.T + bq).reshape(B, N, num_heads, -1).transpose(0, 2, 1, 3)
    k = (xln @ wk.T + bk).reshape(B, N, num_heads, -1).transpose(0, 2, 3, 1)
    v = (xln @ wv.T + bv).reshape(B, N, num_heads, -1).transpose(0, 2, 1, 3)
    dk = C // num_heads
    att = jax.nn.softmax((q @ k) / math.sqrt(dk), axis=-1)
    sa = (att @ v).transpose(0, 2, 1, 3).reshape(B, N, C) @ wo.T + bo
    x = x + sa

    xln2 = ln(x, g2, b2)
    h1 = jax.nn.gelu(xln2 @ wm1.T + bm1, approximate=False)
    x = x + (h1 @ wm2.T + bm2)
    return x.transpose(0, 2, 1).reshape(B, C, T, Hs, Ws)


# ----------------------------- main ---------------------------------------------

if __name__ == "__main__":
    d_model, num_heads, block_exp = 32, 4, 2
    B, T, Hs, Ws = 2, 2, 4, 4                      # N = T*Hs*Ws = 32 tokens

    key = jax.random.PRNGKey(0)
    ks = jax.random.split(key, 8)
    f32 = jnp.float32

    # Deterministic synthetic parameters (shapes follow the PyTorch module).
    wg  = jax.random.normal(ks[0], (d_model, d_model), f32) * 0.05   # Conv3d 1x1x1 weight
    bg  = jnp.zeros((1, d_model), f32)
    g1  = jnp.ones((1, d_model), f32); b1 = jnp.zeros((1, d_model), f32)
    wq  = jax.random.normal(ks[1], (d_model, d_model), f32) * 0.001  # init.normal_(std=0.001)
    wk  = jax.random.normal(ks[2], (d_model, d_model), f32) * 0.001
    wv  = jax.random.normal(ks[3], (d_model, d_model), f32) * 0.001
    wo  = jax.random.normal(ks[4], (d_model, d_model), f32) * 0.001
    bq = bk = bv = bo = jnp.zeros((1, d_model), f32)
    g2  = jnp.ones((1, d_model), f32); b2 = jnp.zeros((1, d_model), f32)
    wm1 = jax.random.normal(ks[5], (block_exp * d_model, d_model), f32) * 0.05
    bm1 = jnp.zeros((1, block_exp * d_model), f32)
    wm2 = jax.random.normal(ks[6], (d_model, block_exp * d_model), f32) * 0.05
    bm2 = jnp.zeros((1, d_model), f32)

    params = (wg, bg, g1, b1, wq, bq, wk, bk, wv, bv, wo, bo, g2, b2, wm1, bm1, wm2, bm2)
    x = jax.random.normal(ks[7], (B, d_model, T, Hs, Ws), f32)

    ref = reference_block(x, params, num_heads=num_heads)

    # f32 matmul path (default): matches the f32 reference tightly.
    out = my_transformer_block(x, params, num_heads=num_heads)
    out = jax.block_until_ready(out)
    assert out.shape == (B, d_model, T, Hs, Ws)
    assert jnp.allclose(out, ref, atol=1e-4, rtol=1e-4), \
        float(jnp.max(jnp.abs(out - ref)))

    # bf16 matmul-operand path (recommended on v6e/v7x): f32 accumulation and
    # f32 LayerNorm/softmax/GELU, so only a small rounding delta vs. f32 ref.
    out_bf16 = my_transformer_block(x, params, num_heads=num_heads,
                                    matmul_dtype=jnp.bfloat16)
    out_bf16 = jax.block_until_ready(out_bf16)
    assert jnp.allclose(out_bf16, ref, atol=2e-2, rtol=2e-2), \
        float(jnp.max(jnp.abs(out_bf16 - ref)))

    print("KERNEL_OK")
</pallas_src>

<mosaic_0001>
module attributes {stable_mosaic.version = 11 : i64} {
  func.func @transformer_block_kernel(%arg0: i32, %arg1: memref<1x32x32xf32, #tpu.memory_space<vmem>>, %arg2: memref<32x32xf32, #tpu.memory_space<vmem>>, %arg3: memref<32x96xf32, #tpu.memory_space<vmem>>, %arg4: memref<32x32xf32, #tpu.memory_space<vmem>>, %arg5: memref<32x64xf32, #tpu.memory_space<vmem>>, %arg6: memref<64x32xf32, #tpu.memory_space<vmem>>, %arg7: memref<8x32xf32, #tpu.memory_space<vmem>>, %arg8: memref<1x96xf32, #tpu.memory_space<vmem>>, %arg9: memref<1x64xf32, #tpu.memory_space<vmem>>, %arg10: memref<1x32x32xf32, #tpu.memory_space<vmem>>) attributes {dimension_semantics = [#tpu.dimension_semantics<parallel>], iteration_bounds = array<i64: 2>, scalar_prefetch = 0 : i64, scratch_operands = 0 : i64, tpu.core_type = #tpu.core_type<tc>, window_params = [{transform_indices = @transform_0, window_bounds = array<i64: 1, 32, 32>}, {pipeline_mode = #tpu.pipeline_mode<synchronous>, transform_indices = @transform_1, window_bounds = array<i64: 32, 32>}, {pipeline_mode = #tpu.pipeline_mode<synchronous>, transform_indices = @transform_2, window_bounds = array<i64: 32, 96>}, {pipeline_mode = #tpu.pipeline_mode<synchronous>, transform_indices = @transform_3, window_bounds = array<i64: 32, 32>}, {pipeline_mode = #tpu.pipeline_mode<synchronous>, transform_indices = @transform_4, window_bounds = array<i64: 32, 64>}, {pipeline_mode = #tpu.pipeline_mode<synchronous>, transform_indices = @transform_5, window_bounds = array<i64: 64, 32>}, {pipeline_mode = #tpu.pipeline_mode<synchronous>, transform_indices = @transform_6, window_bounds = array<i64: 8, 32>}, {pipeline_mode = #tpu.pipeline_mode<synchronous>, transform_indices = @transform_7, window_bounds = array<i64: 1, 96>}, {pipeline_mode = #tpu.pipeline_mode<synchronous>, transform_indices = @transform_8, window_bounds = array<i64: 1, 64>}, {transform_indices = @transform_9, window_bounds = array<i64: 1, 32, 32>}]} {
    %c0 = arith.constant 0 : index
    %c0_0 = arith.constant 0 : index
    %0 = vector.load %arg7[%c0, %c0_0] : memref<8x32xf32, #tpu.memory_space<vmem>>, vector<1x32xf32>
    %c1 = arith.constant 1 : index
    %c0_1 = arith.constant 0 : index
    %1 = vector.load %arg7[%c1, %c0_1] : memref<8x32xf32, #tpu.memory_space<vmem>>, vector<1x32xf32>
    %c2 = arith.constant 2 : index
    %c0_2 = arith.constant 0 : index
    %2 = vector.load %arg7[%c2, %c0_2] : memref<8x32xf32, #tpu.memory_space<vmem>>, vector<1x32xf32>
    %c3 = arith.constant 3 : index
    %c0_3 = arith.constant 0 : index
    %3 = vector.load %arg7[%c3, %c0_3] : memref<8x32xf32, #tpu.memory_space<vmem>>, vector<1x32xf32>
    %c4 = arith.constant 4 : index
    %c0_4 = arith.constant 0 : index
    %4 = vector.load %arg7[%c4, %c0_4] : memref<8x32xf32, #tpu.memory_space<vmem>>, vector<1x32xf32>
    %c5 = arith.constant 5 : index
    %c0_5 = arith.constant 0 : index
    %5 = vector.load %arg7[%c5, %c0_5] : memref<8x32xf32, #tpu.memory_space<vmem>>, vector<1x32xf32>
    %c6 = arith.constant 6 : index
    %c0_6 = arith.constant 0 : index
    %6 = vector.load %arg7[%c6, %c0_6] : memref<8x32xf32, #tpu.memory_space<vmem>>, vector<1x32xf32>
    %c0_7 = arith.constant 0 : index
    %c0_8 = arith.constant 0 : index
    %c0_9 = arith.constant 0 : index
    %7 = vector.load %arg1[%c0_7, %c0_8, %c0_9] : memref<1x32x32xf32, #tpu.memory_space<vmem>>, vector<1x32x32xf32>
    %8 = vector.shape_cast %7 : vector<1x32x32xf32> to vector<32x32xf32>
    %9 = tpu.transpose %8, [1, 0] : vector<32x32xf32> -> vector<32x32xf32>
    %c0_10 = arith.constant 0 : index
    %c0_11 = arith.constant 0 : index
    %10 = vector.load %arg2[%c0_10, %c0_11] : memref<32x32xf32, #tpu.memory_space<vmem>>, vector<32x32xf32>
    %cst = arith.constant dense<0.000000e+00> : vector<32x32xf32>
    %11 = tpu.matmul %9, %10, %cst {dimension_numbers = #tpu.dot_dimension_numbers<[1], [0], [0], [1], [0, 0, 1, 1], [], []>} : vector<32x32xf32>, vector<32x32xf32>, vector<32x32xf32> -> vector<32x32xf32>
    %12 = vector.broadcast %0 : vector<1x32xf32> to vector<32x32xf32>
    %13 = arith.addf %11, %12 : vector<32x32xf32>
    %cst_12 = arith.constant dense<0.000000e+00> : vector<32xf32>
    %14 = vector.multi_reduction <add>, %13, %cst_12 [1] : vector<32x32xf32> to vector<32xf32>
    %15 = vector.shape_cast %14 : vector<32xf32> to vector<32x1xf32>
    %cst_13 = arith.constant 3.200000e+01 : f32
    %16 = vector.broadcast %cst_13 : f32 to vector<32x1xf32>
    %17 = arith.divf %15, %16 : vector<32x1xf32>
    %18 = vector.broadcast %17 : vector<32x1xf32> to vector<32x32xf32>
    %19 = arith.subf %13, %18 : vector<32x32xf32>
    %20 = arith.mulf %19, %19 : vector<32x32xf32>
    %cst_14 = arith.constant dense<0.000000e+00> : vector<32xf32>
    %21 = vector.multi_reduction <add>, %20, %cst_14 [1] : vector<32x32xf32> to vector<32xf32>
    %22 = vector.shape_cast %21 : vector<32xf32> to vector<32x1xf32>
    %cst_15 = arith.constant 3.200000e+01 : f32
    %23 = vector.broadcast %cst_15 : f32 to vector<32x1xf32>
    %24 = arith.divf %22, %23 : vector<32x1xf32>
    %25 = vector.broadcast %17 : vector<32x1xf32> to vector<32x32xf32>
    %26 = arith.subf %13, %25 : vector<32x32xf32>
    %cst_16 = arith.constant 9.99999974E-6 : f32
    %27 = vector.broadcast %cst_16 : f32 to vector<32x1xf32>
    %28 = arith.addf %24, %27 : vector<32x1xf32>
    %29 = math.rsqrt %28 : vector<32x1xf32>
    %30 = vector.broadcast %29 : vector<32x1xf32> to vector<32x32xf32>
    %31 = arith.mulf %26, %30 : vector<32x32xf32>
    %32 = vector.broadcast %1 : vector<1x32xf32> to vector<32x32xf32>
    %33 = arith.mulf %31, %32 : vector<32x32xf32>
    %34 = vector.broadcast %2 : vector<1x32xf32> to vector<32x32xf32>
    %35 = arith.addf %33, %34 : vector<32x32xf32>
    %c0_17 = arith.constant 0 : index
    %c0_18 = arith.constant 0 : index
    %36 = vector.load %arg3[%c0_17, %c0_18] : memref<32x96xf32, #tpu.memory_space<vmem>>, vector<32x96xf32>
    %cst_19 = arith.constant dense<0.000000e+00> : vector<32x96xf32>
    %37 = tpu.matmul %35, %36, %cst_19 {dimension_numbers = #tpu.dot_dimension_numbers<[1], [0], [0], [1], [0, 0, 1, 1], [], []>} : vector<32x32xf32>, vector<32x96xf32>, vector<32x96xf32> -> vector<32x96xf32>
    %c0_20 = arith.constant 0 : index
    %c0_21 = arith.constant 0 : index
    %38 = vector.load %arg8[%c0_20, %c0_21] : memref<1x96xf32, #tpu.memory_space<vmem>>, vector<1x96xf32>
    %39 = vector.broadcast %38 : vector<1x96xf32> to vector<32x96xf32>
    %40 = arith.addf %37, %39 : vector<32x96xf32>
    %cst_22 = arith.constant 0.000000e+00 : f32
    %41 = vector.broadcast %cst_22 : f32 to vector<32x32xf32>
    %42 = vector.extract_strided_slice %40 {offsets = [0, 0], sizes = [32, 8], strides = [1, 1]} : vector<32x96xf32> to vector<32x8xf32>
    %43 = vector.extract_strided_slice %40 {offsets = [0, 32], sizes = [32, 8], strides = [1, 1]} : vector<32x96xf32> to vector<32x8xf32>
    %44 = vector.extract_strided_slice %40 {offsets = [0, 64], sizes = [32, 8], strides = [1, 1]} : vector<32x96xf32> to vector<32x8xf32>
    %cst_23 = arith.constant dense<0.000000e+00> : vector<32x32xf32>
    %45 = tpu.matmul %42, %43, %cst_23 {dimension_numbers = #tpu.dot_dimension_numbers<[1], [1], [0], [0], [0, 0, 1, 0], [], []>} : vector<32x8xf32>, vector<32x8xf32>, vector<32x32xf32> -> vector<32x32xf32>
    %cst_24 = arith.constant dense<0xFF800000> : vector<32xf32>
    %46 = vector.multi_reduction <maximumf>, %45, %cst_24 [1] : vector<32x32xf32> to vector<32xf32>
    %47 = vector.shape_cast %46 : vector<32xf32> to vector<32x1xf32>
    %48 = vector.broadcast %47 : vector<32x1xf32> to vector<32x32xf32>
    %49 = arith.subf %45, %48 : vector<32x32xf32>
    %50 = math.exp %49 : vector<32x32xf32>
    %cst_25 = arith.constant dense<0.000000e+00> : vector<32xf32>
    %51 = vector.multi_reduction <add>, %50, %cst_25 [1] : vector<32x32xf32> to vector<32xf32>
    %52 = vector.shape_cast %51 : vector<32xf32> to vector<32x1xf32>
    %53 = tpu.reciprocal %52 {approx = true} : vector<32x1xf32> -> vector<32x1xf32>
    %54 = vector.broadcast %53 : vector<32x1xf32> to vector<32x32xf32>
    %55 = arith.mulf %50, %54 : vector<32x32xf32>
    %cst_26 = arith.constant dense<0.000000e+00> : vector<32x8xf32>
    %56 = tpu.matmul %55, %44, %cst_26 {dimension_numbers = #tpu.dot_dimension_numbers<[1], [0], [0], [1], [0, 0, 1, 1], [], []>} : vector<32x32xf32>, vector<32x8xf32>, vector<32x8xf32> -> vector<32x8xf32>
    %c0_27 = arith.constant 0 : index
    %c0_28 = arith.constant 0 : index
    %57 = vector.load %arg4[%c0_27, %c0_28] : memref<32x32xf32, #tpu.memory_space<vmem>>, vector<8x32xf32>
    %cst_29 = arith.constant dense<0.000000e+00> : vector<32x32xf32>
    %58 = tpu.matmul %56, %57, %cst_29 {dimension_numbers = #tpu.dot_dimension_numbers<[1], [0], [0], [1], [0, 0, 1, 1], [], []>} : vector<32x8xf32>, vector<8x32xf32>, vector<32x32xf32> -> vector<32x32xf32>
    %59 = arith.addf %41, %58 : vector<32x32xf32>
    %60 = vector.extract_strided_slice %40 {offsets = [0, 8], sizes = [32, 8], strides = [1, 1]} : vector<32x96xf32> to vector<32x8xf32>
    %61 = vector.extract_strided_slice %40 {offsets = [0, 40], sizes = [32, 8], strides = [1, 1]} : vector<32x96xf32> to vector<32x8xf32>
    %62 = vector.extract_strided_slice %40 {offsets = [0, 72], sizes = [32, 8], strides = [1, 1]} : vector<32x96xf32> to vector<32x8xf32>
    %cst_30 = arith.constant dense<0.000000e+00> : vector<32x32xf32>
    %63 = tpu.matmul %60, %61, %cst_30 {dimension_numbers = #tpu.dot_dimension_numbers<[1], [1], [0], [0], [0, 0, 1, 0], [], []>} : vector<32x8xf32>, vector<32x8xf32>, vector<32x32xf32> -> vector<32x32xf32>
    %cst_31 = arith.constant dense<0xFF800000> : vector<32xf32>
    %64 = vector.multi_reduction <maximumf>, %63, %cst_31 [1] : vector<32x32xf32> to vector<32xf32>
    %65 = vector.shape_cast %64 : vector<32xf32> to vector<32x1xf32>
    %66 = vector.broadcast %65 : vector<32x1xf32> to vector<32x32xf32>
    %67 = arith.subf %63, %66 : vector<32x32xf32>
    %68 = math.exp %67 : vector<32x32xf32>
    %cst_32 = arith.constant dense<0.000000e+00> : vector<32xf32>
    %69 = vector.multi_reduction <add>, %68, %cst_32 [1] : vector<32x32xf32> to vector<32xf32>
    %70 = vector.shape_cast %69 : vector<32xf32> to vector<32x1xf32>
    %71 = tpu.reciprocal %70 {approx = true} : vector<32x1xf32> -> vector<32x1xf32>
    %72 = vector.broadcast %71 : vector<32x1xf32> to vector<32x32xf32>
    %73 = arith.mulf %68, %72 : vector<32x32xf32>
    %cst_33 = arith.constant dense<0.000000e+00> : vector<32x8xf32>
    %74 = tpu.matmul %73, %62, %cst_33 {dimension_numbers = #tpu.dot_dimension_numbers<[1], [0], [0], [1], [0, 0, 1, 1], [], []>} : vector<32x32xf32>, vector<32x8xf32>, vector<32x8xf32> -> vector<32x8xf32>
    %c8 = arith.constant 8 : index
    %c0_34 = arith.constant 0 : index
    %75 = vector.load %arg4[%c8, %c0_34] : memref<32x32xf32, #tpu.memory_space<vmem>>, vector<8x32xf32>
    %cst_35 = arith.constant dense<0.000000e+00> : vector<32x32xf32>
    %76 = tpu.matmul %74, %75, %cst_35 {dimension_numbers = #tpu.dot_dimension_numbers<[1], [0], [0], [1], [0, 0, 1, 1], [], []>} : vector<32x8xf32>, vector<8x32xf32>, vector<32x32xf32> -> vector<32x32xf32>
    %77 = arith.addf %59, %76 : vector<32x32xf32>
    %78 = vector.extract_strided_slice %40 {offsets = [0, 16], sizes = [32, 8], strides = [1, 1]} : vector<32x96xf32> to vector<32x8xf32>
    %79 = vector.extract_strided_slice %40 {offsets = [0, 48], sizes = [32, 8], strides = [1, 1]} : vector<32x96xf32> to vector<32x8xf32>
    %80 = vector.extract_strided_slice %40 {offsets = [0, 80], sizes = [32, 8], strides = [1, 1]} : vector<32x96xf32> to vector<32x8xf32>
    %cst_36 = arith.constant dense<0.000000e+00> : vector<32x32xf32>
    %81 = tpu.matmul %78, %79, %cst_36 {dimension_numbers = #tpu.dot_dimension_numbers<[1], [1], [0], [0], [0, 0, 1, 0], [], []>} : vector<32x8xf32>, vector<32x8xf32>, vector<32x32xf32> -> vector<32x32xf32>
    %cst_37 = arith.constant dense<0xFF800000> : vector<32xf32>
    %82 = vector.multi_reduction <maximumf>, %81, %cst_37 [1] : vector<32x32xf32> to vector<32xf32>
    %83 = vector.shape_cast %82 : vector<32xf32> to vector<32x1xf32>
    %84 = vector.broadcast %83 : vector<32x1xf32> to vector<32x32xf32>
    %85 = arith.subf %81, %84 : vector<32x32xf32>
    %86 = math.exp %85 : vector<32x32xf32>
    %cst_38 = arith.constant dense<0.000000e+00> : vector<32xf32>
    %87 = vector.multi_reduction <add>, %86, %cst_38 [1] : vector<32x32xf32> to vector<32xf32>
    %88 = vector.shape_cast %87 : vector<32xf32> to vector<32x1xf32>
    %89 = tpu.reciprocal %88 {approx = true} : vector<32x1xf32> -> vector<32x1xf32>
    %90 = vector.broadcast %89 : vector<32x1xf32> to vector<32x32xf32>
    %91 = arith.mulf %86, %90 : vector<32x32xf32>
    %cst_39 = arith.constant dense<0.000000e+00> : vector<32x8xf32>
    %92 = tpu.matmul %91, %80, %cst_39 {dimension_numbers = #tpu.dot_dimension_numbers<[1], [0], [0], [1], [0, 0, 1, 1], [], []>} : vector<32x32xf32>, vector<32x8xf32>, vector<32x8xf32> -> vector<32x8xf32>
    %c16 = arith.constant 16 : index
    %c0_40 = arith.constant 0 : index
    %93 = vector.load %arg4[%c16, %c0_40] : memref<32x32xf32, #tpu.memory_space<vmem>>, vector<8x32xf32>
    %cst_41 = arith.constant dense<0.000000e+00> : vector<32x32xf32>
    %94 = tpu.matmul %92, %93, %cst_41 {dimension_numbers = #tpu.dot_dimension_numbers<[1], [0], [0], [1], [0, 0, 1, 1], [], []>} : vector<32x8xf32>, vector<8x32xf32>, vector<32x32xf32> -> vector<32x32xf32>
    %95 = arith.addf %77, %94 : vector<32x32xf32>
    %96 = vector.extract_strided_slice %40 {offsets = [0, 24], sizes = [32, 8], strides = [1, 1]} : vector<32x96xf32> to vector<32x8xf32>
    %97 = vector.extract_strided_slice %40 {offsets = [0, 56], sizes = [32, 8], strides = [1, 1]} : vector<32x96xf32> to vector<32x8xf32>
    %98 = vector.extract_strided_slice %40 {offsets = [0, 88], sizes = [32, 8], strides = [1, 1]} : vector<32x96xf32> to vector<32x8xf32>
    %cst_42 = arith.constant dense<0.000000e+00> : vector<32x32xf32>
    %99 = tpu.matmul %96, %97, %cst_42 {dimension_numbers = #tpu.dot_dimension_numbers<[1], [1], [0], [0], [0, 0, 1, 0], [], []>} : vector<32x8xf32>, vector<32x8xf32>, vector<32x32xf32> -> vector<32x32xf32>
    %cst_43 = arith.constant dense<0xFF800000> : vector<32xf32>
    %100 = vector.multi_reduction <maximumf>, %99, %cst_43 [1] : vector<32x32xf32> to vector<32xf32>
    %101 = vector.shape_cast %100 : vector<32xf32> to vector<32x1xf32>
    %102 = vector.broadcast %101 : vector<32x1xf32> to vector<32x32xf32>
    %103 = arith.subf %99, %102 : vector<32x32xf32>
    %104 = math.exp %103 : vector<32x32xf32>
    %cst_44 = arith.constant dense<0.000000e+00> : vector<32xf32>
    %105 = vector.multi_reduction <add>, %104, %cst_44 [1] : vector<32x32xf32> to vector<32xf32>
    %106 = vector.shape_cast %105 : vector<32xf32> to vector<32x1xf32>
    %107 = tpu.reciprocal %106 {approx = true} : vector<32x1xf32> -> vector<32x1xf32>
    %108 = vector.broadcast %107 : vector<32x1xf32> to vector<32x32xf32>
    %109 = arith.mulf %104, %108 : vector<32x32xf32>
    %cst_45 = arith.constant dense<0.000000e+00> : vector<32x8xf32>
    %110 = tpu.matmul %109, %98, %cst_45 {dimension_numbers = #tpu.dot_dimension_numbers<[1], [0], [0], [1], [0, 0, 1, 1], [], []>} : vector<32x32xf32>, vector<32x8xf32>, vector<32x8xf32> -> vector<32x8xf32>
    %c24 = arith.constant 24 : index
    %c0_46 = arith.constant 0 : index
    %111 = vector.load %arg4[%c24, %c0_46] : memref<32x32xf32, #tpu.memory_space<vmem>>, vector<8x32xf32>
    %cst_47 = arith.constant dense<0.000000e+00> : vector<32x32xf32>
    %112 = tpu.matmul %110, %111, %cst_47 {dimension_numbers = #tpu.dot_dimension_numbers<[1], [0], [0], [1], [0, 0, 1, 1], [], []>} : vector<32x8xf32>, vector<8x32xf32>, vector<32x32xf32> -> vector<32x32xf32>
    %113 = arith.addf %95, %112 : vector<32x32xf32>
    %114 = vector.broadcast %3 : vector<1x32xf32> to vector<32x32xf32>
    %115 = arith.addf %113, %114 : vector<32x32xf32>
    %116 = arith.addf %13, %115 : vector<32x32xf32>
    %cst_48 = arith.constant dense<0.000000e+00> : vector<32xf32>
    %117 = vector.multi_reduction <add>, %116, %cst_48 [1] : vector<32x32xf32> to vector<32xf32>
    %118 = vector.shape_cast %117 : vector<32xf32> to vector<32x1xf32>
    %cst_49 = arith.constant 3.200000e+01 : f32
    %119 = vector.broadcast %cst_49 : f32 to vector<32x1xf32>
    %120 = arith.divf %118, %119 : vector<32x1xf32>
    %121 = vector.broadcast %120 : vector<32x1xf32> to vector<32x32xf32>
    %122 = arith.subf %116, %121 : vector<32x32xf32>
    %123 = arith.mulf %122, %122 : vector<32x32xf32>
    %cst_50 = arith.constant dense<0.000000e+00> : vector<32xf32>
    %124 = vector.multi_reduction <add>, %123, %cst_50 [1] : vector<32x32xf32> to vector<32xf32>
    %125 = vector.shape_cast %124 : vector<32xf32> to vector<32x1xf32>
    %cst_51 = arith.constant 3.200000e+01 : f32
    %126 = vector.broadcast %cst_51 : f32 to vector<32x1xf32>
    %127 = arith.divf %125, %126 : vector<32x1xf32>
    %128 = vector.broadcast %120 : vector<32x1xf32> to vector<32x32xf32>
    %129 = arith.subf %116, %128 : vector<32x32xf32>
    %cst_52 = arith.constant 9.99999974E-6 : f32
    %130 = vector.broadcast %cst_52 : f32 to vector<32x1xf32>
    %131 = arith.addf %127, %130 : vector<32x1xf32>
    %132 = math.rsqrt %131 : vector<32x1xf32>
    %133 = vector.broadcast %132 : vector<32x1xf32> to vector<32x32xf32>
    %134 = arith.mulf %129, %133 : vector<32x32xf32>
    %135 = vector.broadcast %4 : vector<1x32xf32> to vector<32x32xf32>
    %136 = arith.mulf %134, %135 : vector<32x32xf32>
    %137 = vector.broadcast %5 : vector<1x32xf32> to vector<32x32xf32>
    %138 = arith.addf %136, %137 : vector<32x32xf32>
    %c0_53 = arith.constant 0 : index
    %c0_54 = arith.constant 0 : index
    %139 = vector.load %arg5[%c0_53, %c0_54] : memref<32x64xf32, #tpu.memory_space<vmem>>, vector<32x64xf32>
    %cst_55 = arith.constant dense<0.000000e+00> : vector<32x64xf32>
    %140 = tpu.matmul %138, %139, %cst_55 {dimension_numbers = #tpu.dot_dimension_numbers<[1], [0], [0], [1], [0, 0, 1, 1], [], []>} : vector<32x32xf32>, vector<32x64xf32>, vector<32x64xf32> -> vector<32x64xf32>
    %c0_56 = arith.constant 0 : index
    %c0_57 = arith.constant 0 : index
    %141 = vector.load %arg9[%c0_56, %c0_57] : memref<1x64xf32, #tpu.memory_space<vmem>>, vector<1x64xf32>
    %142 = vector.broadcast %141 : vector<1x64xf32> to vector<32x64xf32>
    %143 = arith.addf %140, %142 : vector<32x64xf32>
    %cst_58 = arith.constant 5.000000e-01 : f32
    %144 = vector.broadcast %cst_58 : f32 to vector<32x64xf32>
    %145 = arith.mulf %144, %143 : vector<32x64xf32>
    %cst_59 = arith.constant 0.707106769 : f32
    %146 = vector.broadcast %cst_59 : f32 to vector<32x64xf32>
    %147 = arith.mulf %143, %146 : vector<32x64xf32>
    %148 = math.erf %147 : vector<32x64xf32>
    %cst_60 = arith.constant 1.000000e+00 : f32
    %149 = vector.broadcast %cst_60 : f32 to vector<32x64xf32>
    %150 = arith.addf %149, %148 : vector<32x64xf32>
    %151 = arith.mulf %145, %150 : vector<32x64xf32>
    %c0_61 = arith.constant 0 : index
    %c0_62 = arith.constant 0 : index
    %152 = vector.load %arg6[%c0_61, %c0_62] : memref<64x32xf32, #tpu.memory_space<vmem>>, vector<64x32xf32>
    %cst_63 = arith.constant dense<0.000000e+00> : vector<32x32xf32>
    %153 = tpu.matmul %151, %152, %cst_63 {dimension_numbers = #tpu.dot_dimension_numbers<[1], [0], [0], [1], [0, 0, 1, 1], [], []>} : vector<32x64xf32>, vector<64x32xf32>, vector<32x32xf32> -> vector<32x32xf32>
    %154 = vector.broadcast %6 : vector<1x32xf32> to vector<32x32xf32>
    %155 = arith.addf %153, %154 : vector<32x32xf32>
    %156 = arith.addf %116, %155 : vector<32x32xf32>
    %157 = tpu.transpose %156, [1, 0] : vector<32x32xf32> -> vector<32x32xf32>
    %c0_64 = arith.constant 0 : index
    %c0_65 = arith.constant 0 : index
    %c0_66 = arith.constant 0 : index
    %158 = vector.load %arg10[%c0_64, %c0_65, %c0_66] : memref<1x32x32xf32, #tpu.memory_space<vmem>>, vector<1x32x32xf32>
    %159 = vector.shape_cast %158 : vector<1x32x32xf32> to vector<32x32xf32>
    %160 = vector.shape_cast %157 : vector<32x32xf32> to vector<1x32x32xf32>
    tpu.vector_store %arg10[%c0_64, %c0_65, %c0_66], %160 {strides = array<i32>} : memref<1x32x32xf32, #tpu.memory_space<vmem>>, vector<1x32x32xf32>,
    return
  }
  func.func @transform_0(%arg0: i32) -> (i32, i32, i32) {
    %c0_i32 = arith.constant 0 : i32
    %c0_i32_0 = arith.constant 0 : i32
    %c0_i32_1 = arith.constant 0 : i32
    return %arg0, %c0_i32, %c0_i32_0 : i32, i32, i32
  }
  func.func @transform_1(%arg0: i32) -> (i32, i32) {
    %c0_i32 = arith.constant 0 : i32
    %c0_i32_0 = arith.constant 0 : i32
    %c0_i32_1 = arith.constant 0 : i32
    return %c0_i32, %c0_i32_0 : i32, i32
  }
  func.func @transform_2(%arg0: i32) -> (i32, i32) {
    %c0_i32 = arith.constant 0 : i32
    %c0_i32_0 = arith.constant 0 : i32
    %c0_i32_1 = arith.constant 0 : i32
    return %c0_i32, %c0_i32_0 : i32, i32
  }
  func.func @transform_3(%arg0: i32) -> (i32, i32) {
    %c0_i32 = arith.constant 0 : i32
    %c0_i32_0 = arith.constant 0 : i32
    %c0_i32_1 = arith.constant 0 : i32
    return %c0_i32, %c0_i32_0 : i32, i32
  }
  func.func @transform_4(%arg0: i32) -> (i32, i32) {
    %c0_i32 = arith.constant 0 : i32
    %c0_i32_0 = arith.constant 0 : i32
    %c0_i32_1 = arith.constant 0 : i32
    return %c0_i32, %c0_i32_0 : i32, i32
  }
  func.func @transform_5(%arg0: i32) -> (i32, i32) {
    %c0_i32 = arith.constant 0 : i32
    %c0_i32_0 = arith.constant 0 : i32
    %c0_i32_1 = arith.constant 0 : i32
    return %c0_i32, %c0_i32_0 : i32, i32
  }
  func.func @transform_6(%arg0: i32) -> (i32, i32) {
    %c0_i32 = arith.constant 0 : i32
    %c0_i32_0 = arith.constant 0 : i32
    %c0_i32_1 = arith.constant 0 : i32
    return %c0_i32, %c0_i32_0 : i32, i32
  }
  func.func @transform_7(%arg0: i32) -> (i32, i32) {
    %c0_i32 = arith.constant 0 : i32
    %c0_i32_0 = arith.constant 0 : i32
    %c0_i32_1 = arith.constant 0 : i32
    return %c0_i32, %c0_i32_0 : i32, i32
  }
  func.func @transform_8(%arg0: i32) -> (i32, i32) {
    %c0_i32 = arith.constant 0 : i32
    %c0_i32_0 = arith.constant 0 : i32
    %c0_i32_1 = arith.constant 0 : i32
    return %c0_i32, %c0_i32_0 : i32, i32
  }
  func.func @transform_9(%arg0: i32) -> (i32, i32, i32) {
    %c0_i32 = arith.constant 0 : i32
    %c0_i32_0 = arith.constant 0 : i32
    %c0_i32_1 = arith.constant 0 : i32
    return %arg0, %c0_i32, %c0_i32_0 : i32, i32, i32
  }
}

</mosaic_0001>

<bundles_post_ra>
// kernel: tpu_custom_call.1
= control target key start
LH: loop header
LB: loop body
LE: loop exit
PB: predicated region body
PF: predicated region fallthrough
CT: control target
= control target key end

     0   :  { %14 = vsyncpa [#allocation3], 0  ;;  %s4268_s0 = inlined_call_operand.vmem [shape: f32[2,32,32], index: 0, kind: input, shape index: {}]   ;;  %s4269_s1 = inlined_call_operand.vmem [shape: f32[32,32], index: 1, kind: input, shape index: {}]   ;;  %s4270_s2 = inlined_call_operand.hbm [shape: f32[32,96], index: 2, kind: input, shape index: {}]   ;;  %s4271_s3 = inlined_call_operand.hbm [shape: f32[32,32], index: 3, kind: input, shape index: {}]   ;;  %s4272_s4 = inlined_call_operand.hbm [shape: f32[32,64], index: 4, kind: input, shape index: {}]   ;;  %s4273_s5 = inlined_call_operand.vmem [shape: f32[64,32], index: 5, kind: input, shape index: {}]   ;;  %s4274_s6 = inlined_call_operand.vmem [shape: f32[8,32], index: 6, kind: input, shape index: {}]   ;;  %s4275_s7 = inlined_call_operand.vmem [shape: f32[1,96], index: 7, kind: input, shape index: {}]   ;;  %s4276_s8 = inlined_call_operand.vmem [shape: f32[1,64], index: 8, kind: input, shape index: {}]   ;;  %s4277_s9 = inlined_call_operand.hbm [shape: f32[2,32,32], index: 9, kind: output, shape index: {}]  }
   0x1   :  { %15 = vsyncpa [#allocation6], 0 }
   0x2   :  { %16 = vsyncpa [#allocation4], 0 }
   0x3   :  { %18 = vsyncpa [#allocation4 + $0x1], 0  ;;  %s3691_s30 = smov 0   ;;  %s3693_s10 = smov 0  }
   0x4   :  { %s3695_s11 = smov 0   ;;  %s3697_s12 = smov 0  }
   0x5 LB: > { %4286 = sst [smem:[#allocation12_spill]] %s3608_s30  ;;  %s3712_s13 = sadd.s32 4294967295, %s3620_s12   ;;  %s3620_s12 = sphi %s3697_s12, %s4307_s12   ;;  %s3616_s11 = sphi %s3695_s11, %s4309_s11   ;;  %s3612_s10 = sphi %s3693_s10, %s4311_s10   ;;  %s3608_s30 = sphi %s3691_s30, %s4310_s30  }
   0x6   : > { %4287 = sst [smem:[#allocation13_spill]] %s3616_s11  ;;  %s2643_s14 = sadd.s32 4294967294, %s3620_s12  }
   0x7   : > { %s3716_s15 = sadd.s32 1, %s3620_s12   ;;  %s225_s16 = sadd.s32 1, %s3616_s11 }
   0x8   : > { %4288 = sst [smem:[#allocation14_spill]] %s3716_s15  ;;  %s222_s17 = ssub.s32 %s3620_s12, %s3716_s15 }
   0x9   : > { %p235_p0 = scmp.ne.s32.totalorder %s3616_s11, %s3612_s10  ;;  %p223_p1 = scmp.eq.s32.totalorder %s222_s17, 0 }
   0xa   : > { %p236_p2 = scmp.eq.s32.totalorder %s3712_s13, 1  ;;  %p241_p3 = scmp.ne.s32.totalorder %s3612_s10, %s3608_s30 }
   0xb   : > { %p242_p4 = scmp.eq.s32.totalorder %s2643_s14, 1  ;;  %p2644_p7 = scmp.ge.s32.totalorder %s3620_s12, 1 }
   0xc   : > { %s3727_s18 = scalar_select %p223_p1, %s3616_s11, %s225_s16  }
   0xd   : > { %p3729_p5 = por %p236_p2, %p235_p0  ;;  %p3733_p6 = por %p242_p4, %p241_p3 }
   0xe   : > { %4289 = sst [smem:[#allocation15_spill]] %s3727_s18  ;;  %p249_p8 = scmp.lt.s32.totalorder %s3620_s12, 3 }
   0xf   : > { %s4290_s19 = scalar_select %p3729_p5, 1, 0 }
  0x10   : > { %s4291_s20 = scalar_select %p3733_p6, 1, 0 }
  0x11   : > { %p4278_p9 = scmp.eq.s32.totalorder %s3712_s13, 0  ;;  %p3740_p10 = pnand %p2644_p7, %p249_p8 }
  0x12   : > { %4292 = sst [smem:[#allocation16_spill]] %s4291_s20  ;;  %s3622_s22 = smov [#allocation5]  }
  0x13   : > { %s4293_s21 = scalar_select %p3740_p10, 1, 0 }
  0x14   : > { %p3226_p11 = pneg %p3740_p10  ;;  %s277_s23 = sshll.u32 %s3622_s22, 4  ;;  %s3746_s23 = int_to_ptr.vmem [resolvable:$true] %s277_s23 }
  0x15   : > { %s3623_s25 = smov [#allocation2]   ;;  %s3624_s27 = smov [#allocation7]  }
  0x16   : > { %p3750_p12 = pnand %p4278_p9, %p3226_p11  ;;  %s264_s26 = sshll.u32 %s3623_s25, 4  ;;  %s3754_s26 = int_to_ptr.vmem [resolvable:$true] %s264_s26 }
  0x17   : > { %s3756_s28 = sshll.u32 %s3624_s27, 4  ;;  %s3466_s16 = scalar_lea.hbm %s4271_s3, 512  ;;  %s291_s28 = int_to_ptr.vmem [resolvable:$true] %s3756_s28 }
  0x18   : > { %p3467_p13 = scmp.ne.s32.totalorder %s4271_s3, %s3466_s16  ;;  %p3766_p0 = pneg %p3750_p12 }
  0x19   : > { %p3473_p3 = scmp.lt.u32.totalorder %s3466_s16, %s4271_s3 }
  0x1a   : > { %p3469_p1 = pnand %p3766_p0, %p3467_p13 }
  0x1c   : > { %p3470_p2 = pneg %p3469_p1 }
  0x1e   : > { %p3475_p4 = pnand %p3473_p3, %p3470_p2 }
  0x20   : > { %3478 = shalt.err (!%p3475_p4)
}
  0x21   : > { %s3479_s29 = scalar_lea.vmem %s3746_s23, 512  ;;  %p3487_p9 = scmp.lt.s32.totalorder %s3746_s23, %s3746_s23 }
  0x22   : > { %p3480_p7 = scmp.ne.s32.totalorder %s3746_s23, %s3479_s29  ;;  %p3488_p6 = scmp.lt.s32.totalorder %s3479_s29, %s3479_s29 }
  0x24   : > { %p3482_p8 = pnand %p3480_p7, %p3766_p0  ;;  %p3489_p13 = por %p3488_p6, %p3487_p9 }
  0x26   : > { %p3483_p11 = pneg %p3482_p8 }
  0x28   : > { %p3490_p1 = pnand %p3489_p13, %p3483_p11 }
  0x2a   : > { %3493 = shalt.err (!%p3490_p1)
}
  0x2b   : > { %s3625_s14 = smov 128   ;;  %s3626_s16 = smov 8  }
  0x2c   : > { %3232 = dma.hbm_to_vmem [thread:$0]  (!%p3750_p12), %s4271_s3, 512, %s3746_s23, [#allocation6], %s3625_s14, %s3625_s14, %s3626_s16  }
  0x2d   : > { %s3494_s29 = scalar_lea.hbm %s4270_s2, 512 }
  0x2e   : > { %p3495_p6 = scmp.ne.s32.totalorder %s4270_s2, %s3494_s29  ;;  %p3501_p3 = scmp.lt.u32.totalorder %s3494_s29, %s4270_s2 }
  0x30   : > { %p3497_p9 = pnand %p3495_p6, %p3766_p0 }
  0x32   : > { %p3498_p2 = pneg %p3497_p9 }
  0x34   : > { %p3503_p4 = pnand %p3501_p3, %p3498_p2 }
  0x36   : > { %3506 = shalt.err (!%p3503_p4)
}
  0x37   : > { %s3507_s23 = scalar_lea.vmem %s3754_s26, 512  ;;  %p3515_p13 = scmp.lt.s32.totalorder %s3754_s26, %s3754_s26 }
  0x38   : > { %p3508_p7 = scmp.ne.s32.totalorder %s3754_s26, %s3507_s23  ;;  %p3516_p1 = scmp.lt.s32.totalorder %s3507_s23, %s3507_s23 }
  0x3a   : > { %p3510_p8 = pnand %p3508_p7, %p3766_p0  ;;  %p3517_p6 = por %p3516_p1, %p3515_p13 }
  0x3c   : > { %p3511_p11 = pneg %p3510_p8 }
  0x3e   : > { %p3518_p9 = pnand %p3517_p6, %p3511_p11 }
  0x40   : > { %3521 = shalt.err (!%p3518_p9)
}
  0x41   : > { %3229 = dma.hbm_to_vmem [thread:$0]  (!%p3750_p12), %s4270_s2, 512, %s3754_s26, [#allocation3], %s3625_s14, %s3625_s14, %s3626_s16  }
  0x42   : > { %s3522_s17 = scalar_lea.hbm %s4272_s4, 512 }
  0x43   : > { %p3523_p2 = scmp.ne.s32.totalorder %s4272_s4, %s3522_s17  ;;  %p3529_p7 = scmp.lt.u32.totalorder %s3522_s17, %s4272_s4 }
  0x45   : > { %p3525_p3 = pnand %p3523_p2, %p3766_p0 }
  0x47   : > { %p3526_p4 = pneg %p3525_p3 }
  0x49   : > { %p3531_p8 = pnand %p3529_p7, %p3526_p4 }
  0x4b   : > { %3534 = shalt.err (!%p3531_p8)
}
  0x4c   : > { %s3535_s23 = scalar_lea.vmem %s291_s28, 512  ;;  %p3543_p6 = scmp.lt.s32.totalorder %s291_s28, %s291_s28 }
  0x4d   : > { %p3536_p11 = scmp.ne.s32.totalorder %s291_s28, %s3535_s23  ;;  %p3544_p9 = scmp.lt.s32.totalorder %s3535_s23, %s3535_s23 }
  0x4f   : > { %p3538_p13 = pnand %p3536_p11, %p3766_p0  ;;  %p3545_p5 = por %p3544_p9, %p3543_p6 }
  0x51   : > { %p3539_p1 = pneg %p3538_p13 }
  0x53   : > { %p3546_p10 = pnand %p3545_p5, %p3539_p1 }
  0x55   : > { %3549 = shalt.err (!%p3546_p10)
}
  0x56   : > { %3235 = dma.hbm_to_vmem [thread:$0]  (!%p3750_p12), %s4272_s4, 512, %s291_s28, [#allocation6], %s3625_s14, %s3625_s14, %s3626_s16  }
  0x57   : > { %p4296_p2 = scmp.ne.s32.totalorder %s4293_s21, 0 }
  0x58   : > { %p4297_p0 = scmp.eq.s32.totalorder (!%p4296_p2), %s3712_s13, 0 }
  0x59   : > { %326 = sbr.rel (%p4296_p2) target bundleno = 4114 (0x1012), region = 56 }
  0x60   : > { %3595 = dma.done.wait (%p4297_p0), [#allocation3], 512   ;;  %p4298_p3 = pmov %p4297_p0 }
  0x61   : > { %p4299_p5 = pmov %p4297_p0 }
  0x62   : > { %3597 = vsyncadd (%p4298_p3), [#allocation3], 4294966784 }
  0x63   : > { %3599 = dma.done.wait (%p4299_p5), [#allocation6], 1024   ;;  %p4300_p10 = pmov %p4297_p0 }
  0x64   : > { %p370_p4 = scmp.lt.s32.totalorder %s3712_s13, 1  ;;  %v418_v1 = vld [vmem:[%s4269_s1] sm:$0xff]  ;;  %v419_v2 = vld [vmem:[%s4269_s1 + $0x8] sm:$0xff]  ;;  %v420_v5 = vld [vmem:[%s4269_s1 + $0x10] sm:$0xff]  ;;  %vm426_vm0 = vcmask 261120   ;;  %vm713_vm1 = vcmask 64512  }
  0x65   : > { %3601 = vsyncadd (%p4300_p10), [#allocation6], 4294966272  ;;  %v3080_v4 = vpack.c.bf16 %v419_v2, %v418_v1  ;;  %v421_v6 = vld [vmem:[%s4269_s1 + $0x18] sm:$0xff]  ;;  %v2656_v14 = vld [vmem:[%s4274_s6] ss:$0 sm:$0xff]  ;;  %s3628_s16 = smov 64  }
  0x66   : > { %s371_s18 = scalar_select %p370_p4, %s3712_s13, 1  ;;  %v3084_v7 = vpack.c.bf16 %v421_v6, %v420_v5  ;;  %v593_v47 = vld [vmem:[#allocation2] sm:$0xff]  ;;  %v594_v48 = vld [vmem:[#allocation2 + $0x8] sm:$0xff]  ;;  %v595_v50 = vld [vmem:[#allocation2 + $0x10] sm:$0xff]  ;;  %vm2398_vm3 = vcmask 523264  }
  0x67   : > { %3081 = vmatprep.subr.bf16.mxu0 %v3080_v4  ;;  %v3088_v49 = vpack.c.bf16 %v594_v48, %v593_v47  ;;  %v596_v51 = vld [vmem:[#allocation2 + $0x18] sm:$0xff]  ;;  %v2661_v2 = vld [vmem:[%s4274_s6 + $0x1] ss:$0 sm:$0xff]  ;;  %vm3931_vm2 = vmpackc.low %vm713_vm1, %vm713_vm1  ;;  %s3629_s11 = smov 88   ;;  %s3630_s15 = smov 120  }
  0x68   : > { %s2750_s24 = sshll.u32 %s371_s18, 5  ;;  %3083 = vmatpush3.bf16.msra.mxu0 %v3080_v4  ;;  %v3092_v52 = vpack.c.bf16 %v596_v51, %v595_v50  ;;  %v2662_v4 = vld [vmem:[%s4274_s6 + $0x2] ss:$0 sm:$0xff]  ;;  %s3631_s20 = smov 80  }
  0x69   : > { %s374_s14 = scalar_lea.vmem %s4268_s0, %s2750_s24  ;;  %3085 = vmatprep.subr.bf16.mxu0 %v3084_v7  ;;  %3089 = vmatprep.subr.bf16.mxu1 %v3088_v49  ;;  %s3632_s17 = smov 112  }
  0x6a   : > { %v382_v0 = vld [vmem:[%s374_s14] sm:$0xff]  ;;  %v383_v3 = vld [vmem:[%s374_s14 + $0x8] sm:$0xff]  ;;  %v384_v8 = vld [vmem:[%s374_s14 + $0x10] sm:$0xff]  ;;  %3091 = vmatpush3.bf16.msra.mxu1 %v3088_v49  ;;  %s3633_s22 = smov 56   ;;  %s3634_s25 = smov 72  }
  0x6b   : > { %386 = vxpose.xlu0.b32.start [1/4] (short) (narrow) %v382_v0, 32  ;;  %v385_v9 = vld [vmem:[%s374_s14 + $0x18] sm:$0xff]  ;;  %3093 = vmatprep.subr.bf16.mxu1 %v3092_v52  ;;  %s3627_s14 = smov 96   ;;  %s3635_s27 = smov 104  }
  0x6c   : > { %3087 = vmatpush3.bf16.msra.mxu0 %v3084_v7  ;;  %s3636_s29 = smov 48   ;;  %s3637_s23 = smov 40  }
  0x6d   : > { %p4303_p7 = scmp.ne.s32.totalorder %s4290_s19, 0 }
  0x6e   : > { %3095 = vmatpush3.bf16.msra.mxu1 %v3092_v52 }
  0x6f   : > { %387 = vxpose.xlu0.b32.cont [2/4] (short) (narrow) %v383_v3, 32 }
  0x73   : > { %388 = vxpose.xlu0.b32.cont [3/4] (short) (narrow) %v384_v8, 32 }
  0x77   : > { %389 = vxpose.xlu0.b32.end [4/4] (short) (narrow) %v385_v9, 32 }
  0xeb   : > { %v402_v10 = vpop.trf.xlu0 }
  0xec   : > { %2880 = vmatprep.mubr.msk.f32.mxu0 %vm426_vm0, %v402_v10 }
  0xef   : > { %v403_v11 = vpop.trf.xlu0 }
  0xf0   : > { %2881 = vmatmul.mubr.msk.f32.vlgmr.msra.gmra.mrb[0].mxu0 %vm426_vm0, %v403_v11 }
  0xf3   : > { %v404_v12 = vpop.trf.xlu0 }
  0xf4   : > { %2883 = vmatprep.mubr.msk.f32.mxu0 %vm426_vm0, %v404_v12 }
  0xf7   : > { %v405_v13 = vpop.trf.xlu0 }
  0xf8   : > { %2884 = vmatmul.mubr.msk.f32.gmra.mrb[2].mxu0 %vm426_vm0, %v405_v13 }
 0x1c3   : > { %v2882_v15 = vpop.f32.mrb[0].mxu0 }
 0x1c4   : > { %v505_v16 = vpop.f32.mrb[1].mxu0  ;;  %v3874_v18 = vadd.f32 %v2882_v15, %v2656_v14 }
 0x1c5   : > { %v3872_v17 = vadd.f32 %v2656_v14, %v505_v16 }
 0x1c6   : > { %v527_v21 = vsel %vm426_vm0, %v3874_v18, 0.0 }
 0x1c7   : > { %v524_v19 = vsel %vm426_vm0, %v3872_v17, 0.0 }
 0x1c8   : > { %525 = vadd.xlane.f32.xlu1 %v524_v19 }
 0x1cb   : > { %v2885_v20 = vpop.f32.mrb[2].mxu0 }
 0x1cc   : > { %528 = vadd.xlane.f32.xlu1 %v527_v21  ;;  %v515_v22 = vpop.f32.mrb[3].mxu0  ;;  %v3882_v24 = vadd.f32 %v2885_v20, %v2656_v14  ;;  %v2663_v21 = vld [vmem:[%s4275_s7] ss:$0 sm:$0xff] }
 0x1cd   : > { %v3880_v23 = vadd.f32 %v2656_v14, %v515_v22 }
 0x1ce   : > { %v533_v26 = vsel %vm426_vm0, %v3882_v24, 0.0 }
 0x1cf   : > { %v530_v25 = vsel %vm426_vm0, %v3880_v23, 0.0 }
 0x1d0   : > { %531 = vadd.xlane.f32.xlu1 %v530_v25 }
 0x1d4   : > { %534 = vadd.xlane.f32.xlu1 %v533_v26 }
 0x255   : > { %v526_v27 = vpop.xlane.xlu1 %525 }
 0x256   : > { %v537_v28 = vmul.f32 0.03125, %v526_v27 }
 0x258   : > { %v541_v29 = vsub.f32 %v3872_v17, %v537_v28 }
 0x259   : > { %v529_v30 = vpop.xlane.xlu1 %528 }
 0x25a   : > { %v538_v31 = vmul.f32 0.03125, %v529_v30  ;;  %v545_v32 = vmul.f32 %v541_v29, %v541_v29 }
 0x25c   : > { %v542_v33 = vsub.f32 %v3874_v18, %v538_v31  ;;  %v549_v34 = vsel %vm426_vm0, %v545_v32, 0.0 }
 0x25d   : > { %550 = vadd.xlane.f32.xlu0 %v549_v34  ;;  %v532_v35 = vpop.xlane.xlu1 %531 }
 0x25e   : > { %v539_v36 = vmul.f32 0.03125, %v532_v35  ;;  %v546_v37 = vmul.f32 %v542_v33, %v542_v33 }
 0x260   : > { %v543_v38 = vsub.f32 %v3880_v23, %v539_v36  ;;  %v552_v39 = vsel %vm426_vm0, %v546_v37, 0.0 }
 0x261   : > { %553 = vadd.xlane.f32.xlu1 %v552_v39  ;;  %v535_v40 = vpop.xlane.xlu1 %534 }
 0x262   : > { %v540_v41 = vmul.f32 0.03125, %v535_v40  ;;  %v547_v42 = vmul.f32 %v543_v38, %v543_v38 }
 0x264   : > { %v544_v43 = vsub.f32 %v3882_v24, %v540_v41  ;;  %v555_v44 = vsel %vm426_vm0, %v547_v42, 0.0 }
 0x265   : > { %556 = vadd.xlane.f32.xlu1 %v555_v44 }
 0x266   : > { %v548_v45 = vmul.f32 %v544_v43, %v544_v43 }
 0x268   : > { %v558_v46 = vsel %vm426_vm0, %v548_v45, 0.0 }
 0x269   : > { %559 = vadd.xlane.f32.xlu1 %v558_v46 }
 0x2ea   : > { %v551_v53 = vpop.xlane.xlu0 %550 }
 0x2eb   : > { %v561_v54 = vmul.f32 0.03125, %v551_v53 }
 0x2ed   : > { %v565_v55 = vadd.f32 1e-05, %v561_v54 }
 0x2ee   : > { %v554_v56 = vpop.xlane.xlu1 %553 }
 0x2ef   : > { %3378 = vrsqrt.f32 %v565_v55  ;;  %v562_v57 = vmul.f32 0.03125, %v554_v56 }
 0x2f1   : > { %v566_v58 = vadd.f32 1e-05, %v562_v57 }
 0x2f2   : > { %v557_v59 = vpop.xlane.xlu1 %556 }
 0x2f3   : > { %3380 = vrsqrt.f32 %v566_v58  ;;  %v563_v60 = vmul.f32 0.03125, %v557_v59 }
 0x2f5   : > { %v567_v61 = vadd.f32 1e-05, %v563_v60 }
 0x2f6   : > { %v560_v62 = vpop.xlane.xlu1 %559 }
 0x2f7   : > { %3382 = vrsqrt.f32 %v567_v61  ;;  %v564_v63 = vmul.f32 0.03125, %v560_v62 }
 0x2f9   : > { %v3379_v0 = vpop.eup %3378  ;;  %v568_v1 = vadd.f32 1e-05, %v564_v63 }
 0x2fa   : > { %v573_v3 = vmul.f32 %v3379_v0, %v541_v29 }
 0x2fb   : > { %3384 = vrsqrt.f32 %v568_v1 }
 0x2fc   : > { %v581_v5 = vmul.f32 %v2661_v2, %v573_v3 }
 0x2fd   : > { %v3381_v6 = vpop.eup %3380 }
 0x2fe   : > { %v589_v7 = vadd.f32 %v2662_v4, %v581_v5  ;;  %v574_v8 = vmul.f32 %v3381_v6, %v542_v33 }
 0x300   : > { %2894 = vmatprep.mubr.msk.f32.mxu1 %vm426_vm0, %v589_v7  ;;  %v582_v9 = vmul.f32 %v2661_v2, %v574_v8 }
 0x301   : > { %v3383_v10 = vpop.eup %3382 }
 0x302   : > { %v590_v11 = vadd.f32 %v2662_v4, %v582_v9  ;;  %v575_v12 = vmul.f32 %v3383_v10, %v543_v38 }
 0x304   : > { %2895 = vmatmul.mubr.msk.f32.vlgmr.msra.gmra.mrb[0].mxu1 %vm426_vm0, %v590_v11  ;;  %v583_v13 = vmul.f32 %v2661_v2, %v575_v12 }
 0x305   : > { %v3385_v14 = vpop.eup %3384 }
 0x306   : > { %v591_v15 = vadd.f32 %v2662_v4, %v583_v13  ;;  %v576_v16 = vmul.f32 %v3385_v14, %v544_v43 }
 0x308   : > { %2897 = vmatprep.mubr.msk.f32.mxu1 %vm426_vm0, %v591_v15  ;;  %v584_v19 = vmul.f32 %v2661_v2, %v576_v16 }
 0x30a   : > { %v592_v20 = vadd.f32 %v2662_v4, %v584_v19 }
 0x30c   : > { %2898 = vmatmul.mubr.msk.f32.gmra.mrb[2].mxu1 %vm426_vm0, %v592_v20 }
 0x3d7   : > { %v2896_v22 = vpop.f32.mrb[0].mxu1 }
 0x3d8   : > { %v3909_v25 = vadd.f32 %v2896_v22, %v2663_v21  ;;  %v682_v26 = vpop.f32.mrb[1].mxu1 }
 0x3d9   : > { %v3911_v27 = vadd.f32 %v2663_v21, %v682_v26 }
 0x3db   : > { %2908 = vmatprep.mubr.msk.f32.mxu0 %vm713_vm1, %v3911_v27  ;;  %v3917_v28 = vpack.i.bf16 %v3909_v25, %v3911_v27 }
 0x3dd   : > { %3299 = vrot.lane.b32.xlu1 %v3917_v28, %s3627_s14 }
 0x3df   : > { %v2899_v29 = vpop.f32.mrb[2].mxu1 }
 0x3e0   : > { %v3920_v30 = vadd.f32 %v2899_v29, %v2663_v21  ;;  %v692_v31 = vpop.f32.mrb[3].mxu1 }
 0x3e1   : > { %v3922_v32 = vadd.f32 %v2663_v21, %v692_v31 }
 0x3e3   : > { %v3926_v33 = vpack.i.bf16 %v3920_v30, %v3922_v32 }
 0x3e5   : > { %3304 = vrot.lane.b32.xlu1 %v3926_v33, %s3627_s14 }
 0x44f   : > { %v3300_v34 = vpop.permute.xlu1 %3299 }
 0x450   : > { %v3302_v35 = vunpack.i.h.bf16 %v3300_v34  ;;  %v3301_v36 = vunpack.i.l.bf16 %v3300_v34 }
 0x452   : > { %v3096_v38 = vpack.c.bf16 %v3302_v35, %v3301_v36 }
 0x454   : > { %3098 = vmatprep.subr.msk.bf16.mxu0 %vm3931_vm2, %v3096_v38 }
 0x455   : > { %3101 = vmatpush3.bf16.xpose.msk.msra.mxu0 %vm3931_vm2, %v3096_v38 }
 0x457   : > { %v3305_v39 = vpop.permute.xlu1 %3304 }
 0x458   : > { %v3307_v40 = vunpack.i.h.bf16 %v3305_v39  ;;  %v3306_v41 = vunpack.i.l.bf16 %v3305_v39 }
 0x45a   : > { %v3102_v42 = vpack.c.bf16 %v3307_v40, %v3306_v41 }
 0x45c   : > { %3104 = vmatprep.subr.msk.bf16.mxu0 %vm3931_vm2, %v3102_v42 }
 0x45d   : > { %3107 = vmatpush3.bf16.xpose.msk.msra.mxu0 %vm3931_vm2, %v3102_v42 }
 0x464   : > { %2909 = vmatmul.mubr.msk.f32.vlgmr.msra.gmra.mrb[4].mxu0 %vm713_vm1, %v3909_v25 }
 0x465   : > { %2911 = vmatprep.mubr.msk.f32.mxu0 %vm713_vm1, %v3922_v32 }
 0x468   : > { %2912 = vmatmul.mubr.msk.f32.gmra.mrb[6].mxu0 %vm713_vm1, %v3920_v30 }
 0x537   : > { %v2910_v43 = vpop.f32.mrb[4].mxu0 }
 0x538   : > { %v796_v44 = vpop.f32.mrb[5].mxu0  ;;  %v818_v45 = vsel %vm426_vm0, %v2910_v43, -inf }
 0x539   : > { %819 = vmax.xlane.f32.xlu0 %v818_v45  ;;  %v815_v46 = vsel %vm426_vm0, %v796_v44, -inf }
 0x53a   : > { %816 = vmax.xlane.f32.xlu1 %v815_v46 }
 0x53b   : > { %v2913_v47 = vpop.f32.mrb[6].mxu0 }
 0x53c   : > { %v806_v48 = vpop.f32.mrb[7].mxu0  ;;  %v824_v50 = vsel %vm426_vm0, %v2913_v47, -inf }
 0x53d   : > { %v821_v49 = vsel %vm426_vm0, %v806_v48, -inf }
 0x53e   : > { %822 = vmax.xlane.f32.xlu0 %v821_v49 }
 0x542   : > { %825 = vmax.xlane.f32.xlu0 %v824_v50 }
 0x54b   : > { %3309 = vrot.lane.b32.xlu1 %v3917_v28, %s3628_s16 }
 0x54f   : > { %3319 = vrot.lane.b32.xlu1 %v3917_v28, %s3629_s11 }
 0x553   : > { %3324 = vrot.lane.b32.xlu1 %v3926_v33, %s3629_s11 }
 0x557   : > { %969 = vrot.lane.b32.xlu1 %v3911_v27, %s3630_s15 }
 0x55b   : > { %973 = vrot.lane.b32.xlu1 %v3922_v32, %s3630_s15 }
 0x55f   : > { %3329 = vrot.lane.b32.xlu1 %v3917_v28, %s3631_s20 }
 0x563   : > { %1434 = vrot.lane.b32.xlu1 %v3911_v27, %s3632_s17 }
 0x567   : > { %1438 = vrot.lane.b32.xlu1 %v3922_v32, %s3632_s17 }
 0x5c6   : > { %v820_v51 = vpop.xlane.xlu0 %819 }
 0x5c7   : > { %v828_v52 = vsub.f32 %v2910_v43, %v820_v51  ;;  %v817_v53 = vpop.xlane.xlu1 %816 }
 0x5c8   : > { %v827_v54 = vsub.f32 %v796_v44, %v817_v53 }
 0x5c9   : > { %v833_v55 = vmul.f32 1.442695, %v828_v52 }
 0x5ca   : > { %v831_v56 = vmul.f32 1.442695, %v827_v54 }
 0x5cb   : > { %3386 = vpow2.f32 %v833_v55  ;;  %v3310_v57 = vpop.permute.xlu1 %3309  ;;  %v823_v58 = vpop.xlane.xlu0 %822 }
 0x5cc   : > { %v3312_v59 = vunpack.i.h.bf16 %v3310_v57  ;;  %v3311_v60 = vunpack.i.l.bf16 %v3310_v57  ;;  %3388 = vpow2.f32 %v831_v56  ;;  %v829_v62 = vsub.f32 %v806_v48, %v823_v58 }
 0x5ce   : > { %v3108_v61 = vpack.c.bf16 %v3312_v59, %v3311_v60  ;;  %v835_v1 = vmul.f32 1.442695, %v829_v62 }
 0x5cf   : > { %v826_v63 = vpop.xlane.xlu0 %825  ;;  %v3320_v13 = vpop.permute.xlu1 %3319 }
 0x5d0   : > { %v830_v0 = vsub.f32 %v2913_v47, %v826_v63  ;;  %3109 = vmatprep.subr.bf16.mxu1 %v3108_v61  ;;  %v3322_v22 = vunpack.i.h.bf16 %v3320_v13  ;;  %v3321_v26 = vunpack.i.l.bf16 %v3320_v13 }
 0x5d1   : > { %3111 = vmatpush3.bf16.msra.mxu1 %v3108_v61 }
 0x5d2   : > { %v837_v2 = vmul.f32 1.442695, %v830_v0  ;;  %v3116_v38 = vpack.c.bf16 %v3322_v22, %v3321_v26 }
 0x5d3   : > { %v3325_v16 = vpop.permute.xlu1 %3324 }
 0x5d4   : > { %3390 = vpow2.f32 %v837_v2  ;;  %v3327_v44 = vunpack.i.h.bf16 %v3325_v16  ;;  %v3326_v45 = vunpack.i.l.bf16 %v3325_v16 }
 0x5d5   : > { %v3387_v3 = vpop.eup %3386  ;;  %3392 = vpow2.f32 %v835_v1 }
 0x5d6   : > { %v842_v4 = vsel %vm426_vm0, %v3387_v3, 0.0  ;;  %v3389_v5 = vpop.eup %3388  ;;  %v3122_v48 = vpack.c.bf16 %v3327_v44, %v3326_v45 }
 0x5d7   : > { %843 = vadd.xlane.f32.xlu0 %v842_v4  ;;  %v839_v6 = vsel %vm426_vm0, %v3389_v5, 0.0  ;;  %v970_v34 = vpop.permute.xlu1 %969 }
 0x5db   : > { %840 = vadd.xlane.f32.xlu0 %v839_v6  ;;  %v974_v43 = vpop.permute.xlu1 %973 }
 0x5de   : > { %v3391_v7 = vpop.eup %3390 }
 0x5df   : > { %v848_v8 = vsel %vm426_vm0, %v3391_v7, 0.0  ;;  %v3393_v9 = vpop.eup %3392  ;;  %v3330_v49 = vpop.permute.xlu1 %3329 }
 0x5e0   : > { %849 = vadd.xlane.f32.xlu0 %v848_v8  ;;  %v845_v10 = vsel %vm426_vm0, %v3393_v9, 0.0  ;;  %v3332_v51 = vunpack.i.h.bf16 %v3330_v49  ;;  %v3331_v52 = vunpack.i.l.bf16 %v3330_v49 }
 0x5e2   : > { %v3136_v53 = vpack.c.bf16 %v3332_v51, %v3331_v52 }
 0x5e3   : > { %v1435_v58 = vpop.permute.xlu1 %1434 }
 0x5e4   : > { %846 = vadd.xlane.f32.xlu0 %v845_v10 }
 0x5e7   : > { %v1439_v60 = vpop.permute.xlu1 %1438 }
 0x5fa   : > { %3314 = vrot.lane.b32.xlu0 %v3926_v33, %s3628_s16 }
 0x5fe   : > { %971 = vrot.lane.b32.xlu0 %v3909_v25, %s3630_s15 }
 0x602   : > { %975 = vrot.lane.b32.xlu0 %v3920_v30, %s3630_s15  ;;  %s367_s15 = sand.u32 1, %s3612_s10  }
 0x603   : > { %s4227_s26 = scalar_lea.sflag [#allocation4], %s367_s15 }
 0x606   : > { %3334 = vrot.lane.b32.xlu0 %v3926_v33, %s3631_s20  ;;  %s2653_s20 = sshll.u32 %s367_s15, 5 }
 0x60a   : > { %1436 = vrot.lane.b32.xlu0 %v3909_v25, %s3632_s17 }
 0x60e   : > { %1440 = vrot.lane.b32.xlu0 %v3920_v30, %s3632_s17  ;;  %s369_s17 = scalar_lea.vmem [#allocation8], %s2653_s20 }
 0x664   : > { %v844_v11 = vpop.xlane.xlu0 %843 }
 0x668   : > { %v841_v12 = vpop.xlane.xlu0 %840 }
 0x669   : > { %3394 = vrcp.f32 %v841_v12 }
 0x66a   : > { %3396 = vrcp.f32 %v844_v11 }
 0x66d   : > { %v850_v14 = vpop.xlane.xlu0 %849 }
 0x671   : > { %v847_v15 = vpop.xlane.xlu0 %846 }
 0x672   : > { %3398 = vrcp.f32 %v847_v15 }
 0x673   : > { %v3395_v19 = vpop.eup %3394  ;;  %3400 = vrcp.f32 %v850_v14 }
 0x674   : > { %v855_v20 = vmul.f32 %v3395_v19, %v3389_v5  ;;  %v3397_v36 = vpop.eup %3396 }
 0x675   : > { %v3315_v21 = vpop.permute.xlu0 %3314  ;;  %v856_v40 = vmul.f32 %v3397_v36, %v3387_v3 }
 0x676   : > { %v3317_v29 = vunpack.i.h.bf16 %v3315_v21  ;;  %v3316_v31 = vunpack.i.l.bf16 %v3315_v21  ;;  %2922 = vmatprep.mubr.msk.f32.mxu1 %vm426_vm0, %v855_v20 }
 0x678   : > { %v3112_v35 = vpack.c.bf16 %v3317_v29, %v3316_v31 }
 0x679   : > { %v972_v46 = vpop.permute.xlu0 %971 }
 0x67a   : > { %3113 = vmatprep.subr.bf16.mxu1 %v3112_v35 }
 0x67b   : > { %3115 = vmatpush3.bf16.msra.mxu1 %v3112_v35 }
 0x67c   : > { %v3399_v39 = vpop.eup %3398  ;;  %3118 = vmatprep.subr.msk.bf16.mxu1 %vm3931_vm2, %v3116_v38 }
 0x67d   : > { %v3401_v41 = vpop.eup %3400  ;;  %v857_v42 = vmul.f32 %v3399_v39, %v3393_v9  ;;  %v976_v50 = vpop.permute.xlu0 %975 }
 0x67e   : > { %2923 = vmatmul.mubr.msk.f32.vlgmr.msra.gmra.mrb[4].mxu1 %vm426_vm0, %v856_v40  ;;  %v858_v47 = vmul.f32 %v3401_v41, %v3391_v7 }
 0x67f   : > { %2925 = vmatprep.mubr.msk.f32.mxu1 %vm426_vm0, %v857_v42 }
 0x681   : > { %v3335_v54 = vpop.permute.xlu0 %3334 }
 0x682   : > { %2926 = vmatmul.mubr.msk.f32.gmra.mrb[6].mxu1 %vm426_vm0, %v858_v47  ;;  %v3337_v55 = vunpack.i.h.bf16 %v3335_v54  ;;  %v3336_v56 = vunpack.i.l.bf16 %v3335_v54 }
 0x683   : > { %2936 = vmatprep.mubr.msk.f32.mxu1 %vm713_vm1, %v970_v34 }
 0x684   : > { %3121 = vmatpush3.bf16.xpose.msk.msra.mxu1 %vm3931_vm2, %v3116_v38  ;;  %v3142_v57 = vpack.c.bf16 %v3337_v55, %v3336_v56 }
 0x685   : > { %3124 = vmatprep.subr.msk.bf16.mxu1 %vm3931_vm2, %v3122_v48  ;;  %v1437_v59 = vpop.permute.xlu0 %1436 }
 0x689   : > { %v1441_v61 = vpop.permute.xlu0 %1440 }
 0x68c   : > { %3127 = vmatpush3.bf16.xpose.msk.msra.mxu1 %vm3931_vm2, %v3122_v48 }
 0x68d   : > { %3138 = vmatprep.subr.msk.bf16.mxu1 %vm3931_vm2, %v3136_v53 }
 0x693   : > { %2937 = vmatmul.mubr.msk.f32.vlgmr.msra.gmra.mrb[8].mxu1 %vm713_vm1, %v972_v46 }
 0x694   : > { %2939 = vmatprep.mubr.msk.f32.mxu1 %vm713_vm1, %v974_v43  ;;  %3141 = vmatpush3.bf16.xpose.msk.msra.mxu1 %vm3931_vm2, %v3136_v53 }
 0x695   : > { %3144 = vmatprep.subr.msk.bf16.mxu1 %vm3931_vm2, %v3142_v57 }
 0x697   : > { %2940 = vmatmul.mubr.msk.f32.gmra.mrb[10].mxu1 %vm713_vm1, %v976_v50 }
 0x698   : > { %2980 = vmatprep.mubr.msk.f32.mxu1 %vm713_vm1, %v1435_v58 }
 0x69c   : > { %3147 = vmatpush3.bf16.xpose.msk.msra.mxu1 %vm3931_vm2, %v3142_v57 }
 0x6a3   : > { %2981 = vmatmul.mubr.msk.f32.vlgmr.msra.gmra.mrb[12].mxu1 %vm713_vm1, %v1437_v59 }
 0x6a4   : > { %2983 = vmatprep.mubr.msk.f32.mxu1 %vm713_vm1, %v1439_v60 }
 0x6a7   : > { %2984 = vmatmul.mubr.msk.f32.gmra.mrb[14].mxu1 %vm713_vm1, %v1441_v61 }
 0x751   : > { %v4011_v62 = vpop.f32.mrb[4].mxu1 }
 0x752   : > { %v4013_v63 = vpop.f32.mrb[5].mxu1 }
 0x755   : > { %v4015_v0 = vpop.f32.mrb[6].mxu1 }
 0x756   : > { %v4017_v1 = vpop.f32.mrb[7].mxu1 }
 0x766   : > { %v2938_v2 = vpop.f32.mrb[8].mxu1 }
 0x767   : > { %v1067_v3 = vpop.f32.mrb[9].mxu1  ;;  %v1089_v4 = vsel %vm426_vm0, %v2938_v2, -inf }
 0x768   : > { %1090 = vmax.xlane.f32.xlu0 %v1089_v4  ;;  %v1086_v5 = vsel %vm426_vm0, %v1067_v3, -inf }
 0x769   : > { %1087 = vmax.xlane.f32.xlu1 %v1086_v5 }
 0x76a   : > { %v2941_v6 = vpop.f32.mrb[10].mxu1 }
 0x76b   : > { %v1077_v7 = vpop.f32.mrb[11].mxu1  ;;  %v1095_v9 = vsel %vm426_vm0, %v2941_v6, -inf }
 0x76c   : > { %v1092_v8 = vsel %vm426_vm0, %v1077_v7, -inf }
 0x76d   : > { %1093 = vmax.xlane.f32.xlu0 %v1092_v8 }
 0x771   : > { %1096 = vmax.xlane.f32.xlu0 %v1095_v9 }
 0x776   : > { %v4023_v10 = vpop.f32.mrb[12].mxu1 }
 0x777   : > { %v4025_v11 = vpop.f32.mrb[13].mxu1  ;;  %v1554_v45 = vsel %vm426_vm0, %v4023_v10, -inf }
 0x778   : > { %v1551_v46 = vsel %vm426_vm0, %v4025_v11, -inf }
 0x77a   : > { %v4027_v12 = vpop.f32.mrb[14].mxu1 }
 0x77b   : > { %v4029_v13 = vpop.f32.mrb[15].mxu1 }
 0x77c   : > { %v1557_v47 = vsel %vm426_vm0, %v4029_v13, -inf }
 0x7f5   : > { %v1091_v14 = vpop.xlane.xlu0 %1090 }
 0x7f6   : > { %v1099_v15 = vsub.f32 %v2938_v2, %v1091_v14  ;;  %v1088_v16 = vpop.xlane.xlu1 %1087 }
 0x7f7   : > { %v1098_v19 = vsub.f32 %v1067_v3, %v1088_v16 }
 0x7f8   : > { %v1104_v20 = vmul.f32 1.442695, %v1099_v15 }
 0x7f9   : > { %v1102_v21 = vmul.f32 1.442695, %v1098_v19 }
 0x7fa   : > { %3402 = vpow2.f32 %v1104_v20  ;;  %v1094_v22 = vpop.xlane.xlu0 %1093 }
 0x7fb   : > { %3404 = vpow2.f32 %v1102_v21  ;;  %v1100_v26 = vsub.f32 %v1077_v7, %v1094_v22 }
 0x7fd   : > { %v1106_v29 = vmul.f32 1.442695, %v1100_v26 }
 0x7fe   : > { %v1097_v31 = vpop.xlane.xlu0 %1096 }
 0x7ff   : > { %3406 = vpow2.f32 %v1106_v29  ;;  %v1101_v34 = vsub.f32 %v2941_v6, %v1097_v31 }
 0x801   : > { %v1108_v35 = vmul.f32 1.442695, %v1101_v34 }
 0x803   : > { %3408 = vpow2.f32 %v1108_v35 }
 0x804   : > { %v4031_v36 = vpop.eup %3402 }
 0x805   : > { %v3405_v38 = vpop.eup %3404  ;;  %v1113_v39 = vsel %vm426_vm0, %v4031_v36, 0.0 }
 0x806   : > { %1114 = vadd.xlane.f32.xlu0 %v1113_v39  ;;  %v1110_v40 = vsel %vm426_vm0, %v3405_v38, 0.0 }
 0x807   : > { %1111 = vadd.xlane.f32.xlu1 %v1110_v40 }
 0x809   : > { %v4036_v41 = vpop.eup %3406 }
 0x80a   : > { %v1116_v42 = vsel %vm426_vm0, %v4036_v41, 0.0 }
 0x80b   : > { %1117 = vadd.xlane.f32.xlu1 %v1116_v42 }
 0x80d   : > { %v4040_v43 = vpop.eup %3408 }
 0x80e   : > { %v1119_v44 = vsel %vm426_vm0, %v4040_v43, 0.0 }
 0x80f   : > { %1120 = vadd.xlane.f32.xlu0 %v1119_v44 }
 0x81c   : > { %3339 = vrot.lane.b32.xlu1 %v3917_v28, %s3633_s22 }
 0x820   : > { %3349 = vrot.lane.b32.xlu1 %v3917_v28, %s3634_s25 }
 0x824   : > { %3354 = vrot.lane.b32.xlu1 %v3926_v33, %s3634_s25  ;;  %s2751_s25 = sshll.u32 %s3712_s13, 9  ;;  %s3638_s13 = smov [#allocation8]  }
 0x825   : > { %3344 = vrot.lane.b32.xlu0 %v3926_v33, %s3633_s22  ;;  %s2550_s22 = sshll.u32 %s369_s17, 4  ;;  %s3554_s18 = sshll.u32 %s3638_s13, 4  ;;  %s4219_s22 = int_to_ptr.vmem [resolvable:$true] %s2550_s22  ;;  %s3555_s18 = int_to_ptr.vmem [resolvable:$false] %s3554_s18 }
 0x826   : > { %s3550_s30 = scalar_lea.vmem %s4219_s22, 512  ;;  %s3556_s24 = scalar_lea.vmem %s3555_s18, 1024 }
 0x827   : > { %p3551_p12 = scmp.ne.s32.totalorder %s4219_s22, %s3550_s30  ;;  %p3557_p13 = scmp.lt.s32.totalorder %s4219_s22, %s3555_s18 }
 0x828   : > { %1806 = vrot.lane.b32.xlu1 %v3911_v27, %s3635_s27  ;;  %v1560_v27 = vsel %vm426_vm0, %v4027_v12, -inf  ;;  %p3558_p1 = scmp.lt.s32.totalorder %s3556_s24, %s3550_s30 }
 0x829   : > { %1808 = vrot.lane.b32.xlu0 %v3909_v25, %s3635_s27  ;;  %p3552_p8 = pnand %p3551_p12, %p4303_p7 }
 0x82a   : > { %p3559_p6 = por %p3558_p1, %p3557_p13 }
 0x82b   : > { %p3553_p11 = pneg %p3552_p8 }
 0x82c   : > { %1810 = vrot.lane.b32.xlu1 %v3922_v32, %s3635_s27 }
 0x82d   : > { %1812 = vrot.lane.b32.xlu0 %v3920_v30, %s3635_s27  ;;  %p3560_p9 = pnand %p3559_p6, %p3553_p11 }
 0x84c   : > { %1555 = vmax.xlane.f32.xlu0 %v1554_v45 }
 0x850   : > { %1552 = vmax.xlane.f32.xlu1 %v1551_v46  ;;  %1558 = vmax.xlane.f32.xlu0 %v1557_v47  ;;  %v1239_v47 = vld [vmem:[#allocation5 + $0x8] sm:$0xff] }
 0x854   : > { %1561 = vmax.xlane.f32.xlu0 %v1560_v27  ;;  %v968_v27 = vld [vmem:[#allocation5] sm:$0xff] }
 0x893   : > { %v1115_v32 = vpop.xlane.xlu0 %1114 }
 0x894   : > { %v1112_v25 = vpop.xlane.xlu1 %1111 }
 0x895   : > { %3410 = vrcp.f32 %v1112_v25 }
 0x896   : > { %3412 = vrcp.f32 %v1115_v32 }
 0x898   : > { %v1118_v30 = vpop.xlane.xlu1 %1117 }
 0x899   : > { %3414 = vrcp.f32 %v1118_v30 }
 0x89c   : > { %v3340_v48 = vpop.permute.xlu1 %3339  ;;  %v1121_v49 = vpop.xlane.xlu0 %1120 }
 0x89d   : > { %v3342_v50 = vunpack.i.h.bf16 %v3340_v48  ;;  %v3341_v51 = vunpack.i.l.bf16 %v3340_v48  ;;  %3416 = vrcp.f32 %v1121_v49 }
 0x89f   : > { %v3411_v52 = vpop.eup %3410  ;;  %v3128_v53 = vpack.c.bf16 %v3342_v50, %v3341_v51 }
 0x8a0   : > { %v3350_v54 = vpop.permute.xlu1 %3349  ;;  %v3345_v55 = vpop.permute.xlu0 %3344  ;;  %v1126_v56 = vmul.f32 %v3411_v52, %v3405_v38 }
 0x8a1   : > { %v3352_v57 = vunpack.i.h.bf16 %v3350_v54  ;;  %v3351_v58 = vunpack.i.l.bf16 %v3350_v54  ;;  %v3347_v59 = vunpack.i.h.bf16 %v3345_v55  ;;  %v3346_v60 = vunpack.i.l.bf16 %v3345_v55  ;;  %3129 = vmatprep.subr.bf16.mxu0 %v3128_v53  ;;  %v3413_v3 = vpop.eup %3412 }
 0x8a2   : > { %3131 = vmatpush3.bf16.msra.mxu0 %v3128_v53  ;;  %2950 = vmatprep.mubr.msk.f32.mxu0 %vm426_vm0, %v1126_v56  ;;  %v1127_v8 = vmul.f32 %v3413_v3, %v4031_v36 }
 0x8a3   : > { %v3156_v61 = vpack.c.bf16 %v3352_v57, %v3351_v58  ;;  %v3132_v2 = vpack.c.bf16 %v3347_v59, %v3346_v60  ;;  %v3415_v5 = vpop.eup %3414 }
 0x8a4   : > { %v3355_v4 = vpop.permute.xlu1 %3354  ;;  %v1128_v16 = vmul.f32 %v3415_v5, %v4036_v41  ;;  %v1809_v20 = vpop.permute.xlu0 %1808 }
 0x8a5   : > { %v3357_v6 = vunpack.i.h.bf16 %v3355_v4  ;;  %v3356_v7 = vunpack.i.l.bf16 %v3355_v4  ;;  %3133 = vmatprep.subr.bf16.mxu0 %v3132_v2  ;;  %3158 = vmatprep.subr.msk.bf16.mxu1 %vm3931_vm2, %v3156_v61 }
 0x8a6   : > { %3135 = vmatpush3.bf16.msra.mxu0 %v3132_v2  ;;  %3161 = vmatpush3.bf16.xpose.msk.msra.mxu1 %vm3931_vm2, %v3156_v61 }
 0x8a7   : > { %v3162_v9 = vpack.c.bf16 %v3357_v6, %v3356_v7  ;;  %v3417_v14 = vpop.eup %3416  ;;  %2956 = vmatprep.subr.mxu0 %v1239_v47 }
 0x8a8   : > { %v1807_v15 = vpop.permute.xlu1 %1806  ;;  %v1129_v19 = vmul.f32 %v3417_v14, %v4040_v43  ;;  %v1813_v22 = vpop.permute.xlu0 %1812 }
 0x8a9   : > { %2951 = vmatmul.mubr.msk.f32.vlgmr.msra.gmra.mrb[8].mxu0 %vm426_vm0, %v1127_v8  ;;  %3164 = vmatprep.subr.msk.bf16.mxu1 %vm3931_vm2, %v3162_v9 }
 0x8aa   : > { %3016 = vmatprep.mubr.msk.f32.mxu1 %vm713_vm1, %v1807_v15  ;;  %2953 = vmatprep.mubr.msk.f32.mxu0 %vm426_vm0, %v1128_v16 }
 0x8ab   : > { %2957 = vmatpush3.msra.mxu0 %v1239_v47 }
 0x8ac   : > { %v1811_v21 = vpop.permute.xlu1 %1810  ;;  %2964 = vmatprep.subr.mxu0 %v968_v27 }
 0x8ad   : > { %2954 = vmatmul.mubr.msk.f32.gmra.mrb[10].mxu0 %vm426_vm0, %v1129_v19  ;;  %v1704_v19 = vld [vmem:[#allocation5 + $0x10] sm:$0xff] }
 0x8ae   : > { %3167 = vmatpush3.bf16.xpose.msk.msra.mxu1 %vm3931_vm2, %v3162_v9 }
 0x8b5   : > { %3017 = vmatmul.mubr.msk.f32.vlgmr.msra.gmra.mrb[16].mxu1 %vm713_vm1, %v1809_v20 }
 0x8b6   : > { %3019 = vmatprep.mubr.msk.f32.mxu1 %vm713_vm1, %v1811_v21 }
 0x8b9   : > { %3020 = vmatmul.mubr.msk.f32.gmra.mrb[18].mxu1 %vm713_vm1, %v1813_v22 }
 0x8d9   : > { %v1556_v26 = vpop.xlane.xlu0 %1555 }
 0x8da   : > { %v1564_v29 = vsub.f32 %v4023_v10, %v1556_v26 }
 0x8dc   : > { %v1569_v31 = vmul.f32 1.442695, %v1564_v29 }
 0x8dd   : > { %v1553_v34 = vpop.xlane.xlu1 %1552  ;;  %v1559_v35 = vpop.xlane.xlu0 %1558 }
 0x8de   : > { %3418 = vpow2.f32 %v1569_v31  ;;  %v1563_v36 = vsub.f32 %v4025_v11, %v1553_v34  ;;  %v1565_v37 = vsub.f32 %v4029_v13, %v1559_v35 }
 0x8e0   : > { %v1567_v38 = vmul.f32 1.442695, %v1563_v36  ;;  %v1571_v39 = vmul.f32 1.442695, %v1565_v37 }
 0x8e1   : > { %v1562_v40 = vpop.xlane.xlu0 %1561 }
 0x8e2   : > { %3420 = vpow2.f32 %v1567_v38  ;;  %v1566_v41 = vsub.f32 %v4027_v12, %v1562_v40 }
 0x8e3   : > { %3422 = vpow2.f32 %v1571_v39 }
 0x8e4   : > { %v1573_v42 = vmul.f32 1.442695, %v1566_v41 }
 0x8e6   : > { %3424 = vpow2.f32 %v1573_v42 }
 0x8e8   : > { %v4083_v43 = vpop.eup %3418 }
 0x8e9   : > { %v1578_v10 = vsel %vm426_vm0, %v4083_v43, 0.0 }
 0x8ea   : > { %1579 = vadd.xlane.f32.xlu0 %v1578_v10 }
 0x8ec   : > { %v3421_v44 = vpop.eup %3420 }
 0x8ed   : > { %v1575_v11 = vsel %vm426_vm0, %v3421_v44, 0.0  ;;  %v4088_v45 = vpop.eup %3422 }
 0x8ee   : > { %1576 = vadd.xlane.f32.xlu1 %v1575_v11  ;;  %v1581_v12 = vsel %vm426_vm0, %v4088_v45, 0.0 }
 0x8f0   : > { %v4090_v13 = vpop.eup %3424 }
 0x8f1   : > { %v1584_v46 = vsel %vm426_vm0, %v4090_v13, 0.0 }
 0x8f2   : > { %1582 = vadd.xlane.f32.xlu1 %v1581_v12  ;;  %1585 = vadd.xlane.f32.xlu0 %v1584_v46 }
 0x903   : > { %3359 = vrot.lane.b32.xlu1 %v3917_v28, %s3636_s29 }
 0x908   : > { %3364 = vrot.lane.b32.xlu0 %v3926_v33, %s3636_s29 }
 0x977   : > { %v1580_v25 = vpop.xlane.xlu0 %1579 }
 0x97b   : > { %v1577_v32 = vpop.xlane.xlu1 %1576 }
 0x97c   : > { %v2952_v30 = vpop.f32.mrb[8].mxu0  ;;  %3426 = vrcp.f32 %v1577_v32 }
 0x97d   : > { %v1220_v48 = vpop.f32.mrb[9].mxu0  ;;  %3428 = vrcp.f32 %v1580_v25 }
 0x97e   : > { %2958 = vmatprep.mubr.msk.f32.mxu0 %vm713_vm1, %v1220_v48 }
 0x97f   : > { %v1583_v49 = vpop.xlane.xlu1 %1582  ;;  %v1586_v50 = vpop.xlane.xlu0 %1585  ;;  %2959 = vmatmul.mubr.msk.f32.vlgmr.msra.gmra.mrb[12].mxu0 %vm713_vm1, %v2952_v30 }
 0x980   : > { %v2955_v51 = vpop.f32.mrb[10].mxu0  ;;  %2965 = vmatpush3.msra.mxu0 %v968_v27  ;;  %3430 = vrcp.f32 %v1583_v49 }
 0x981   : > { %v1230_v52 = vpop.f32.mrb[11].mxu0  ;;  %3432 = vrcp.f32 %v1586_v50 }
 0x982   : > { %2961 = vmatprep.mubr.msk.f32.mxu0 %vm713_vm1, %v1230_v52 }
 0x983   : > { %v3360_v53 = vpop.permute.xlu1 %3359  ;;  %v3365_v54 = vpop.permute.xlu0 %3364  ;;  %2962 = vmatmul.mubr.msk.f32.gmra.mrb[14].mxu0 %vm713_vm1, %v2955_v51 }
 0x984   : > { %v3362_v55 = vunpack.i.h.bf16 %v3360_v53  ;;  %v3361_v56 = vunpack.i.l.bf16 %v3360_v53  ;;  %v3367_v57 = vunpack.i.h.bf16 %v3365_v54  ;;  %v3366_v58 = vunpack.i.l.bf16 %v3365_v54  ;;  %2966 = vmatprep.mubr.msk.f32.mxu0 %vm713_vm1, %v4013_v63 }
 0x986   : > { %v3148_v59 = vpack.c.bf16 %v3362_v55, %v3361_v56  ;;  %v3427_v60 = vpop.eup %3426  ;;  %v3152_v61 = vpack.c.bf16 %v3367_v57, %v3366_v58  ;;  %v2076_v57 = vld [vmem:[#allocation5 + $0x18] sm:$0xff] }
 0x987   : > { %2967 = vmatmul.mubr.msk.f32.vlgmr.msra.gmra.mrb[12].mxu0 %vm713_vm1, %v4011_v62  ;;  %v1591_v5 = vmul.f32 %v3427_v60, %v3421_v44  ;;  %v3429_v6 = vpop.eup %3428 }
 0x988   : > { %2969 = vmatprep.mubr.msk.f32.mxu0 %vm713_vm1, %v4017_v1  ;;  %3149 = vmatprep.subr.bf16.mxu0 %v3148_v59  ;;  %v3018_v2 = vpop.f32.mrb[16].mxu1  ;;  %v1592_v9 = vmul.f32 %v3429_v6, %v4083_v43  ;;  %v2732_v6 = vld [vmem:[%s4274_s6 + $0x3] ss:$0 sm:$0xff] }
 0x989   : > { %3151 = vmatpush3.bf16.msra.mxu0 %v3148_v59  ;;  %v1904_v3 = vpop.f32.mrb[17].mxu1  ;;  %v1926_v4 = vsel %vm426_vm0, %v3018_v2, -inf }
 0x98a   : > { %1927 = vmax.xlane.f32.xlu0 %v1926_v4  ;;  %3153 = vmatprep.subr.bf16.mxu0 %v3152_v61  ;;  %v1923_v63 = vsel %vm426_vm0, %v1904_v3, -inf  ;;  %v3431_v62 = vpop.eup %3430 }
 0x98b   : > { %1924 = vmax.xlane.f32.xlu1 %v1923_v63  ;;  %2970 = vmatmul.mubr.msk.f32.gmra.mrb[14].mxu0 %vm713_vm1, %v4015_v0  ;;  %v3433_v15 = vpop.eup %3432  ;;  %v1593_v16 = vmul.f32 %v3431_v62, %v4088_v45 }
 0x98c   : > { %2994 = vmatprep.mubr.msk.f32.mxu0 %vm426_vm0, %v1591_v5  ;;  %v3021_v1 = vpop.f32.mrb[18].mxu1  ;;  %v1594_v0 = vmul.f32 %v3433_v15, %v4090_v13 }
 0x98d   : > { %3155 = vmatpush3.bf16.msra.mxu0 %v3152_v61  ;;  %v1914_v7 = vpop.f32.mrb[19].mxu1  ;;  %v1932_v8 = vsel %vm426_vm0, %v3021_v1, -inf }
 0x98e   : > { %1933 = vmax.xlane.f32.xlu0 %v1932_v8  ;;  %v1929_v14 = vsel %vm426_vm0, %v1914_v7, -inf  ;;  %3000 = vmatprep.subr.mxu0 %v1704_v19 }
 0x98f   : > { %1930 = vmax.xlane.f32.xlu1 %v1929_v14 }
 0x990   : > { %2995 = vmatmul.mubr.msk.f32.vlgmr.msra.gmra.mrb[16].mxu0 %vm426_vm0, %v1592_v9 }
 0x991   : > { %2997 = vmatprep.mubr.msk.f32.mxu0 %vm426_vm0, %v1593_v16  ;;  %3001 = vmatpush3.msra.mxu0 %v1704_v19 }
 0x994   : > { %2998 = vmatmul.mubr.msk.f32.gmra.mrb[18].mxu0 %vm426_vm0, %v1594_v0 }
 0xa17   : > { %v1928_v20 = vpop.xlane.xlu0 %1927 }
 0xa18   : > { %v1936_v21 = vsub.f32 %v3018_v2, %v1928_v20  ;;  %v1925_v22 = vpop.xlane.xlu1 %1924 }
 0xa19   : > { %v1935_v26 = vsub.f32 %v1904_v3, %v1925_v22 }
 0xa1a   : > { %v1941_v29 = vmul.f32 1.442695, %v1936_v21 }
 0xa1b   : > { %v1939_v31 = vmul.f32 1.442695, %v1935_v26  ;;  %v1934_v34 = vpop.xlane.xlu0 %1933 }
 0xa1c   : > { %3434 = vpow2.f32 %v1941_v29  ;;  %v1938_v35 = vsub.f32 %v3021_v1, %v1934_v34  ;;  %v1931_v36 = vpop.xlane.xlu1 %1930 }
 0xa1d   : > { %3436 = vpow2.f32 %v1939_v31  ;;  %v1937_v37 = vsub.f32 %v1914_v7, %v1931_v36 }
 0xa1e   : > { %v1945_v38 = vmul.f32 1.442695, %v1938_v35 }
 0xa1f   : > { %v1943_v39 = vmul.f32 1.442695, %v1937_v37 }
 0xa20   : > { %3438 = vpow2.f32 %v1945_v38 }
 0xa21   : > { %3440 = vpow2.f32 %v1943_v39 }
 0xa26   : > { %v3435_v40 = vpop.eup %3434 }
 0xa27   : > { %v3437_v41 = vpop.eup %3436  ;;  %v1950_v42 = vsel %vm426_vm0, %v3435_v40, 0.0 }
 0xa28   : > { %1951 = vadd.xlane.f32.xlu0 %v1950_v42  ;;  %v1947_v43 = vsel %vm426_vm0, %v3437_v41, 0.0 }
 0xa29   : > { %1948 = vadd.xlane.f32.xlu1 %v1947_v43 }
 0xa2a   : > { %v3439_v10 = vpop.eup %3438 }
 0xa2b   : > { %v3441_v44 = vpop.eup %3440  ;;  %v1956_v11 = vsel %vm426_vm0, %v3439_v10, 0.0 }
 0xa2c   : > { %1957 = vadd.xlane.f32.xlu0 %v1956_v11  ;;  %v1953_v45 = vsel %vm426_vm0, %v3441_v44, 0.0 }
 0xa2d   : > { %1954 = vadd.xlane.f32.xlu1 %v1953_v45 }
 0xa3e   : > { %3369 = vrot.lane.b32.xlu1 %v3917_v28, %s3637_s23 }
 0xa42   : > { %3374 = vrot.lane.b32.xlu0 %v3926_v33, %s3637_s23  ;;  %s4224_s23 = scalar_lea.hbm %s4277_s9, %s2751_s25 }
 0xa63   : > { %v2996_v13 = vpop.f32.mrb[16].mxu0 }
 0xa64   : > { %v1685_v12 = vpop.f32.mrb[17].mxu0 }
 0xa65   : > { %3002 = vmatprep.mubr.msk.f32.mxu0 %vm713_vm1, %v1685_v12 }
 0xa66   : > { %3003 = vmatmul.mubr.msk.f32.vlgmr.msra.gmra.mrb[12].mxu0 %vm713_vm1, %v2996_v13 }
 0xa67   : > { %v2999_v46 = vpop.f32.mrb[18].mxu0 }
 0xa68   : > { %v1695_v47 = vpop.f32.mrb[19].mxu0 }
 0xa69   : > { %3005 = vmatprep.mubr.msk.f32.mxu0 %vm713_vm1, %v1695_v47  ;;  %v2259_v47 = vld [vmem:[#allocation7 + $0x8] sm:$0xff] }
 0xa6a   : > { %3006 = vmatmul.mubr.msk.f32.gmra.mrb[14].mxu0 %vm713_vm1, %v2999_v46  ;;  %v2258_v46 = vld [vmem:[#allocation7] sm:$0xff] }
 0xab5   : > { %v1952_v27 = vpop.xlane.xlu0 %1951 }
 0xab6   : > { %v1949_v25 = vpop.xlane.xlu1 %1948 }
 0xab7   : > { %3442 = vrcp.f32 %v1949_v25  ;;  %v2260_v25 = vld [vmem:[#allocation7 + $0x10] sm:$0xff] }
 0xab8   : > { %3444 = vrcp.f32 %v1952_v27  ;;  %v3176_v27 = vpack.c.bf16 %v2259_v47, %v2258_v46 }
 0xab9   : > { %v1958_v32 = vpop.xlane.xlu0 %1957 }
 0xaba   : > { %v1955_v30 = vpop.xlane.xlu1 %1954  ;;  %3177 = vmatprep.subr.bf16.mxu1 %v3176_v27 }
 0xabb   : > { %3446 = vrcp.f32 %v1955_v30  ;;  %3179 = vmatpush3.bf16.msra.mxu1 %v3176_v27 }
 0xabc   : > { %3448 = vrcp.f32 %v1958_v32  ;;  %v2261_v32 = vld [vmem:[#allocation7 + $0x18] sm:$0xff] }
 0xabd   : > { %v3375_v28 = vpop.permute.xlu0 %3374  ;;  %v3180_v30 = vpack.c.bf16 %v2261_v32, %v2260_v25 }
 0xabe   : > { %v3370_v33 = vpop.permute.xlu1 %3369  ;;  %v3377_v48 = vunpack.i.h.bf16 %v3375_v28  ;;  %v3376_v49 = vunpack.i.l.bf16 %v3375_v28 }
 0xabf   : > { %v3372_v50 = vunpack.i.h.bf16 %v3370_v33  ;;  %v3371_v51 = vunpack.i.l.bf16 %v3370_v33  ;;  %3181 = vmatprep.subr.bf16.mxu1 %v3180_v30 }
 0xac0   : > { %v3172_v55 = vpack.c.bf16 %v3377_v48, %v3376_v49  ;;  %3183 = vmatpush3.bf16.msra.mxu1 %v3180_v30 }
 0xac1   : > { %v3443_v52 = vpop.eup %3442  ;;  %v3168_v53 = vpack.c.bf16 %v3372_v50, %v3371_v51 }
 0xac2   : > { %v1963_v54 = vmul.f32 %v3443_v52, %v3437_v41  ;;  %v3445_v56 = vpop.eup %3444 }
 0xac3   : > { %3169 = vmatprep.subr.bf16.mxu0 %v3168_v53  ;;  %v1964_v59 = vmul.f32 %v3445_v56, %v3435_v40 }
 0xac4   : > { %3171 = vmatpush3.bf16.msra.mxu0 %v3168_v53  ;;  %3030 = vmatprep.mubr.msk.f32.mxu0 %vm426_vm0, %v1963_v54 }
 0xac5   : > { %3173 = vmatprep.subr.bf16.mxu0 %v3172_v55  ;;  %v3447_v58 = vpop.eup %3446 }
 0xac6   : > { %v3449_v60 = vpop.eup %3448  ;;  %v1965_v61 = vmul.f32 %v3447_v58, %v3441_v44 }
 0xac7   : > { %v1966_v2 = vmul.f32 %v3449_v60, %v3439_v10 }
 0xac8   : > { %3175 = vmatpush3.bf16.msra.mxu0 %v3172_v55 }
 0xac9   : > { %3036 = vmatprep.subr.mxu0 %v2076_v57 }
 0xacb   : > { %3031 = vmatmul.mubr.msk.f32.vlgmr.msra.gmra.mrb[20].mxu0 %vm426_vm0, %v1964_v59  ;;  %v2733_v59 = vld [vmem:[%s4274_s6 + $0x4] ss:$0 sm:$0xff] }
 0xacc   : > { %3033 = vmatprep.mubr.msk.f32.mxu0 %vm426_vm0, %v1965_v61  ;;  %3037 = vmatpush3.msra.mxu0 %v2076_v57 }
 0xacf   : > { %3034 = vmatmul.mubr.msk.f32.gmra.mrb[22].mxu0 %vm426_vm0, %v1966_v2 }
 0xb9e   : > { %v3032_v3 = vpop.f32.mrb[20].mxu0 }
 0xb9f   : > { %v2057_v4 = vpop.f32.mrb[21].mxu0 }
 0xba0   : > { %3038 = vmatprep.mubr.msk.f32.mxu0 %vm713_vm1, %v2057_v4 }
 0xba1   : > { %3039 = vmatmul.mubr.msk.f32.vlgmr.msra.gmra.mrb[12].mxu0 %vm713_vm1, %v3032_v3  ;;  %v2734_v3 = vld [vmem:[%s4274_s6 + $0x5] ss:$0 sm:$0xff] }
 0xba2   : > { %v3035_v63 = vpop.f32.mrb[22].mxu0 }
 0xba3   : > { %v2067_v5 = vpop.f32.mrb[23].mxu0 }
 0xba4   : > { %3041 = vmatprep.mubr.msk.f32.mxu0 %vm713_vm1, %v2067_v5 }
 0xba5   : > { %3042 = vmatmul.mubr.msk.f32.gmra.mrb[14].mxu0 %vm713_vm1, %v3035_v63 }
 0xc74   : > { %v3040_v62 = vpop.f32.mrb[12].mxu0 }
 0xc75   : > { %v2183_v1 = vadd.f32 %v3040_v62, %v2732_v6  ;;  %v2155_v7 = vpop.f32.mrb[13].mxu0 }
 0xc76   : > { %v2182_v8 = vadd.f32 %v2732_v6, %v2155_v7 }
 0xc77   : > { %v4143_v9 = vadd.f32 %v2183_v1, %v3874_v18 }
 0xc78   : > { %v4146_v14 = vadd.f32 %v2182_v8, %v3872_v17  ;;  %v3043_v15 = vpop.f32.mrb[14].mxu0 }
 0xc79   : > { %v2185_v16 = vadd.f32 %v3043_v15, %v2732_v6  ;;  %v2165_v0 = vpop.f32.mrb[15].mxu0  ;;  %v2193_v19 = vsel %vm426_vm0, %v4143_v9, 0.0 }
 0xc7a   : > { %v2184_v20 = vadd.f32 %v2732_v6, %v2165_v0  ;;  %2194 = vadd.xlane.f32.xlu0 %v2193_v19  ;;  %v2190_v21 = vsel %vm426_vm0, %v4146_v14, 0.0 }
 0xc7b   : > { %v4153_v22 = vadd.f32 %v2185_v16, %v3882_v24  ;;  %2191 = vadd.xlane.f32.xlu1 %v2190_v21  ;;  %v2387_v21 = vld [vmem:[%s4273_s5 + $0x8] sm:$0xff] }
 0xc7c   : > { %v4156_v18 = vadd.f32 %v2184_v20, %v3880_v23  ;;  %v2386_v20 = vld [vmem:[%s4273_s5] sm:$0xff] }
 0xc7d   : > { %v2199_v17 = vsel %vm426_vm0, %v4153_v22, 0.0 }
 0xc7e   : > { %2200 = vadd.xlane.f32.xlu0 %v2199_v17  ;;  %v2196_v26 = vsel %vm426_vm0, %v4156_v18, 0.0  ;;  %v3184_v17 = vpack.c.bf16 %v2387_v21, %v2386_v20 }
 0xc7f   : > { %2197 = vadd.xlane.f32.xlu1 %v2196_v26  ;;  %v2388_v26 = vld [vmem:[%s4273_s5 + $0x10] sm:$0xff] }
 0xc80   : > { %3185 = vmatprep.subr.bf16.mxu1 %v3184_v17 }
 0xd07   : > { %v2195_v29 = vpop.xlane.xlu0 %2194 }
 0xd08   : > { %v2203_v31 = vmul.f32 0.03125, %v2195_v29  ;;  %v2192_v34 = vpop.xlane.xlu1 %2191  ;;  %v2389_v29 = vld [vmem:[%s4273_s5 + $0x18] sm:$0xff] }
 0xd09   : > { %v2202_v35 = vmul.f32 0.03125, %v2192_v34  ;;  %v2390_v34 = vld [vmem:[%s4273_s5 + $0x20] sm:$0xff] }
 0xd0a   : > { %v2207_v36 = vsub.f32 %v4143_v9, %v2203_v31  ;;  %v3188_v31 = vpack.c.bf16 %v2389_v29, %v2388_v26 }
 0xd0b   : > { %v2206_v24 = vsub.f32 %v4146_v14, %v2202_v35  ;;  %v2201_v37 = vpop.xlane.xlu0 %2200  ;;  %v2391_v35 = vld [vmem:[%s4273_s5 + $0x28] sm:$0xff] }
 0xd0c   : > { %v2205_v38 = vmul.f32 0.03125, %v2201_v37  ;;  %v2198_v23 = vpop.xlane.xlu1 %2197  ;;  %v2211_v39 = vmul.f32 %v2207_v36, %v2207_v36  ;;  %v2393_v37 = vld [vmem:[%s4273_s5 + $0x38] sm:$0xff] }
 0xd0d   : > { %v2204_v40 = vmul.f32 0.03125, %v2198_v23  ;;  %v2210_v41 = vmul.f32 %v2206_v24, %v2206_v24  ;;  %v2735_v23 = vld [vmem:[%s4276_s8] ss:$0 sm:$0xff] }
 0xd0e   : > { %v2209_v42 = vsub.f32 %v4153_v22, %v2205_v38  ;;  %v2217_v43 = vsel %vm426_vm0, %v2211_v39, 0.0 }
 0xd0f   : > { %v2208_v10 = vsub.f32 %v4156_v18, %v2204_v40  ;;  %2218 = vadd.xlane.f32.xlu0 %v2217_v43  ;;  %v2214_v44 = vsel %vm426_vm0, %v2210_v41, 0.0 }
 0xd10   : > { %2215 = vadd.xlane.f32.xlu1 %v2214_v44  ;;  %v2213_v11 = vmul.f32 %v2209_v42, %v2209_v42 }
 0xd11   : > { %v2212_v45 = vmul.f32 %v2208_v10, %v2208_v10 }
 0xd12   : > { %v2223_v13 = vsel %vm426_vm0, %v2213_v11, 0.0 }
 0xd13   : > { %2224 = vadd.xlane.f32.xlu0 %v2223_v13  ;;  %v2220_v12 = vsel %vm426_vm0, %v2212_v45, 0.0 }
 0xd14   : > { %2221 = vadd.xlane.f32.xlu1 %v2220_v12 }
 0xd9c   : > { %v2219_v28 = vpop.xlane.xlu0 %2218 }
 0xd9d   : > { %v2227_v33 = vmul.f32 0.03125, %v2219_v28  ;;  %v2216_v48 = vpop.xlane.xlu1 %2215 }
 0xd9e   : > { %v2226_v49 = vmul.f32 0.03125, %v2216_v48 }
 0xd9f   : > { %v2231_v50 = vadd.f32 1e-05, %v2227_v33 }
 0xda0   : > { %v2230_v51 = vadd.f32 1e-05, %v2226_v49  ;;  %v2225_v52 = vpop.xlane.xlu0 %2224 }
 0xda1   : > { %3450 = vrsqrt.f32 %v2231_v50  ;;  %v2229_v53 = vmul.f32 0.03125, %v2225_v52  ;;  %v2222_v54 = vpop.xlane.xlu1 %2221 }
 0xda2   : > { %3452 = vrsqrt.f32 %v2230_v51  ;;  %v2228_v55 = vmul.f32 0.03125, %v2222_v54 }
 0xda3   : > { %v2233_v56 = vadd.f32 1e-05, %v2229_v53 }
 0xda4   : > { %v2232_v57 = vadd.f32 1e-05, %v2228_v55 }
 0xda5   : > { %3454 = vrsqrt.f32 %v2233_v56 }
 0xda6   : > { %3456 = vrsqrt.f32 %v2232_v57  ;;  %v2740_v57 = vld [vmem:[%s4274_s6 + $0x6] ss:$0 sm:$0xff] }
 0xdab   : > { %v3451_v58 = vpop.eup %3450 }
 0xdac   : > { %v3453_v60 = vpop.eup %3452  ;;  %v2239_v61 = vmul.f32 %v3451_v58, %v2207_v36  ;;  %v3192_v36 = vpack.c.bf16 %v2391_v35, %v2390_v34 }
 0xdad   : > { %v2238_v2 = vmul.f32 %v3453_v60, %v2206_v24  ;;  %v2392_v24 = vld [vmem:[%s4273_s5 + $0x30] sm:$0xff] }
 0xdae   : > { %v2247_v4 = vmul.f32 %v2733_v59, %v2239_v61  ;;  %v3196_v38 = vpack.c.bf16 %v2393_v37, %v2392_v24 }
 0xdaf   : > { %v3455_v63 = vpop.eup %3454  ;;  %v2246_v5 = vmul.f32 %v2733_v59, %v2238_v2 }
 0xdb0   : > { %v3457_v6 = vpop.eup %3456  ;;  %v2241_v62 = vmul.f32 %v3455_v63, %v2209_v42  ;;  %v2255_v8 = vadd.f32 %v2734_v3, %v2247_v4 }
 0xdb1   : > { %v2254_v1 = vadd.f32 %v2734_v3, %v2246_v5  ;;  %v2240_v7 = vmul.f32 %v3457_v6, %v2208_v10 }
 0xdb2   : > { %v2249_v15 = vmul.f32 %v2733_v59, %v2241_v62 }
 0xdb3   : > { %3052 = vmatprep.mubr.msk.f32.mxu1 %vm426_vm0, %v2254_v1  ;;  %v2248_v16 = vmul.f32 %v2733_v59, %v2240_v7 }
 0xdb4   : > { %3053 = vmatmul.mubr.msk.f32.vlgmr.msra.gmra.mrb[20].mxu1 %vm426_vm0, %v2255_v8  ;;  %v2257_v19 = vadd.f32 %v2734_v3, %v2249_v15 }
 0xdb5   : > { %v2256_v0 = vadd.f32 %v2734_v3, %v2248_v16  ;;  %3187 = vmatpush3.bf16.msra.mxu1 %v3184_v17 }
 0xdb6   : > { %3189 = vmatprep.subr.bf16.mxu1 %v3188_v31 }
 0xdb7   : > { %3055 = vmatprep.mubr.msk.f32.mxu1 %vm426_vm0, %v2256_v0 }
 0xdb8   : > { %3056 = vmatmul.mubr.msk.f32.gmra.mrb[22].mxu1 %vm426_vm0, %v2257_v19 }
 0xdb9   : > { %3191 = vmatpush3.bf16.msra.mxu1 %v3188_v31 }
 0xdba   : > { %3193 = vmatprep.subr.bf16.mxu1 %v3192_v36 }
 0xdbd   : > { %3195 = vmatpush3.bf16.msra.mxu1 %v3192_v36 }
 0xdbe   : > { %3197 = vmatprep.subr.bf16.mxu1 %v3196_v38 }
 0xdc1   : > { %3199 = vmatpush3.bf16.msra.mxu1 %v3196_v38 }
 0xe87   : > { %v3054_v39 = vpop.f32.mrb[20].mxu1 }
 0xe88   : > { %v2353_v40 = vadd.f32 %v3054_v39, %v2735_v23  ;;  %v2347_v41 = vpop.f32.mrb[21].mxu1 }
 0xe89   : > { %v2348_v42 = vadd.f32 %v2735_v23, %v2347_v41 }
 0xe8a   : > { %v2371_v43 = vmul.f32 0.70710677, %v2353_v40  ;;  %v2367_v28 = vmul.f32 0.5, %v2353_v40 }
 0xe8b   : > { %v2370_v10 = vmul.f32 0.70710677, %v2348_v42  ;;  %v3057_v44 = vpop.f32.mrb[22].mxu1  ;;  %v2366_v32 = vmul.f32 0.5, %v2348_v42 }
 0xe8c   : > { %3458 = verf.f32 %v2371_v43  ;;  %v2363_v11 = vadd.f32 %v3057_v44, %v2735_v23  ;;  %v2357_v45 = vpop.f32.mrb[23].mxu1 }
 0xe8d   : > { %3460 = verf.f32 %v2370_v10  ;;  %v2358_v13 = vadd.f32 %v2735_v23, %v2357_v45 }
 0xe8e   : > { %v2373_v12 = vmul.f32 0.70710677, %v2363_v11  ;;  %v2369_v54 = vmul.f32 0.5, %v2363_v11 }
 0xe8f   : > { %v2372_v46 = vmul.f32 0.70710677, %v2358_v13  ;;  %v2368_v52 = vmul.f32 0.5, %v2358_v13 }
 0xe90   : > { %3462 = verf.f32 %v2373_v12 }
 0xe91   : > { %3464 = verf.f32 %v2372_v46 }
 0xe96   : > { %v3459_v47 = vpop.eup %3458 }
 0xe97   : > { %v3461_v27 = vpop.eup %3460  ;;  %v2379_v25 = vadd.f32 1.0, %v3459_v47 }
 0xe98   : > { %v2378_v30 = vadd.f32 1.0, %v3461_v27 }
 0xe99   : > { %v2383_v50 = vmul.f32 %v2379_v25, %v2367_v28 }
 0xe9a   : > { %v3463_v33 = vpop.eup %3462  ;;  %v2382_v48 = vmul.f32 %v2378_v30, %v2366_v32 }
 0xe9b   : > { %v3465_v49 = vpop.eup %3464  ;;  %v2381_v51 = vadd.f32 1.0, %v3463_v33 }
 0xe9c   : > { %v2380_v53 = vadd.f32 1.0, %v3465_v49  ;;  %3074 = vmatprep.mubr.msk.f32.mxu1 %vm2398_vm3, %v2382_v48 }
 0xe9d   : > { %3075 = vmatmul.mubr.msk.f32.vlgmr.msra.gmra.mrb[24].mxu1 %vm2398_vm3, %v2383_v50  ;;  %v2385_v56 = vmul.f32 %v2381_v51, %v2369_v54 }
 0xe9e   : > { %v2384_v55 = vmul.f32 %v2380_v53, %v2368_v52 }
 0xea0   : > { %3077 = vmatprep.mubr.msk.f32.mxu1 %vm2398_vm3, %v2384_v55 }
 0xea1   : > { %3078 = vmatmul.mubr.msk.f32.gmra.mrb[26].mxu1 %vm2398_vm3, %v2385_v56 }
 0xf70   : > { %v3076_v58 = vpop.f32.mrb[24].mxu1 }
 0xf71   : > { %v2477_v59 = vpop.f32.mrb[25].mxu1  ;;  %v2483_v61 = vadd.f32 %v3076_v58, %v2740_v57 }
 0xf72   : > { %v2478_v60 = vadd.f32 %v2740_v57, %v2477_v59 }
 0xf73   : > { %v2497_v63 = vadd.f32 %v2483_v61, %v4143_v9 }
 0xf74   : > { %v3079_v2 = vpop.f32.mrb[26].mxu1  ;;  %v2496_v3 = vadd.f32 %v2478_v60, %v4146_v14 }
 0xf75   : > { %v2487_v4 = vpop.f32.mrb[27].mxu1  ;;  %v2493_v6 = vadd.f32 %v3079_v2, %v2740_v57 }
 0xf76   : > { %2500 = vxpose.xlu1.b32.start [1/4] (short) (narrow) %v2496_v3, 32  ;;  %v2488_v5 = vadd.f32 %v2740_v57, %v2487_v4 }
 0xf77   : > { %v2499_v1 = vadd.f32 %v2493_v6, %v4153_v22 }
 0xf78   : > { %v2498_v62 = vadd.f32 %v2488_v5, %v4156_v18 }
 0xf7a   : > { %2501 = vxpose.xlu1.b32.cont [2/4] (short) (narrow) %v2497_v63, 32 }
 0xf7e   : > { %2502 = vxpose.xlu1.b32.cont [3/4] (short) (narrow) %v2498_v62, 32 }
 0xf82   : > { %2503 = vxpose.xlu1.b32.end [4/4] (short) (narrow) %v2499_v1, 32 }
 0xff6   : > { %v2516_v7 = vpop.trf.xlu1 }
 0xff7   : > { %2532 = vst.msk [vmem:[%s369_s17] sm:$0xff] %vm426_vm0, %v2516_v7 }
 0xffa   : > { %v2517_v14 = vpop.trf.xlu1 }
 0xffb   : > { %2533 = vst.msk [vmem:[%s369_s17 + $0x8] sm:$0xff] %vm426_vm0, %v2517_v14 }
 0xffe   : > { %v2518_v9 = vpop.trf.xlu1 }
 0xfff   : > { %2534 = vst.msk [vmem:[%s369_s17 + $0x10] sm:$0xff] %vm426_vm0, %v2518_v9 }
0x1002   : > { %v2519_v22 = vpop.trf.xlu1 }
0x1003   : > { %2535 = vst.msk [vmem:[%s369_s17 + $0x18] sm:$0xff] %vm426_vm0, %v2519_v22 }
0x1004   : > { %3563 = shalt.err (!%p3560_p9)
}
0x1005   : > { %s3564_s28 = scalar_lea.hbm %s4224_s23, 512  ;;  %s3568_s16 = scalar_lea.hbm %s4277_s9, 1024 }
0x1006   : > { %p3565_p2 = scmp.ne.s32.totalorder %s4224_s23, %s3564_s28  ;;  %p3569_p5 = scmp.lt.u32.totalorder %s4224_s23, %s4277_s9 }
0x1007   : > { %p3570_p10 = scmp.lt.u32.totalorder %s3568_s16, %s3564_s28  ;;  %p3572_p12 = scmp.lt.u32.totalorder %s3564_s28, %s4224_s23 }
0x1008   : > { %p3566_p0 = pnand %p3565_p2, %p4303_p7 }
0x1009   : > { %p3571_p4 = por %p3570_p10, %p3569_p5 }
0x100a   : > { %p3567_p3 = pneg %p3566_p0 }
0x100b   : > { %p3573_p8 = por %p3572_p12, %p3571_p4 }
0x100d   : > { %p3574_p11 = pnand %p3573_p8, %p3567_p3 }
0x100f   : > { %3577 = shalt.err (!%p3574_p11)
}
0x1010   : > { %s3639_s20 = smov 128   ;;  %s3640_s17 = smov 8  }
0x1011   : > { %3224 = dma.vmem_to_hbm [thread:$0]  (%p4303_p7), %s4219_s22, 512, %s4224_s23, %s4227_s26, %s3639_s20, %s3639_s20, %s3640_s17  }
0x1012 PF: > { %s4304_s25 = sld [smem:[#allocation12_spill]]  ;;  %s4305_s27 = sld [smem:[#allocation16_spill]] }
0x1013   : > { %p3246_p13 = scmp.ge.s32.totalorder %s3620_s12, 2 }
0x1018   : > { %s2565_s29 = sand.u32 1, %s4304_s25   ;;  %p4306_p1 = scmp.ne.s32.totalorder %s4305_s27, 0 }
0x1019   : > { %s2566_s30 = scalar_lea.sflag [#allocation4], %s2565_s29 }
0x101a   : > { %p3237_p6 = pnand %p3246_p13, %p4306_p1 }
0x101c   : > { %3603 = dma.done.wait (!%p3237_p6), %s2566_s30, 512  }
0x101d   : > { %3605 = vsyncadd (!%p3237_p6), %s2566_s30, 4294966784  ;;  %s4307_s12 = sld [smem:[#allocation14_spill]]  ;;  %s4308_s13 = sld [smem:[#allocation13_spill]] }
0x101e   : > { %s4309_s11 = sld [smem:[#allocation15_spill]]  ;;  %s4310_s30 = smov %s3612_s10 }
0x1023   : > { %p21_p9 = scmp.ge.s32.totalorder %s4307_s12, 4   ;;  %s4311_s10 = smov %s4308_s13 }
0x1025   :  { %23 = sbr.rel (!%p21_p9) target bundleno = 5 (0x5), region = 104 }
0x102c   :  { %2571 = vsyncpa [#allocation3], 1 }
0x102d   :  { %2573 = vsyncpa [#allocation3 + $0x1], 1 }
0x102e   :  { %2574 = vsyncpa [#allocation6], 1 }
0x102f   :  { %2575 = vsyncpa [#allocation4], 1 }
0x1030   :  { %2577 = vsyncpa [#allocation4 + $0x1], 1 }

</bundles_post_ra>
